<compile_context>
chip_gen: v5e
topology: v5e:2x2
jax: 0.10.0
libtpu: 0.0.40
codegen_flags: <defaults>
</compile_context>

<pallas_src>
import functools

import jax
import jax.numpy as jnp
from jax import lax
from jax.experimental import pallas as pl
from jax.experimental.pallas import tpu as pltpu

LEAKY_SLOPE = 0.2
IN_EPS = 1e-5  # nn.InstanceNorm2d default


def _f32_to_bf16_bits(v):
    """Round-to-nearest-even f32 -> bf16, returned as uint32 in [0, 0xFFFF].

    Pure 32-bit integer ops (no 16-bit vector types needed in the kernel).
    """
    b = pltpu.bitcast(v, jnp.uint32)
    lsb = (b >> 16) & 1
    rounded = b + 0x7FFF + lsb
    return rounded >> 16


def _tconv_kernel(x_ref, w_ref, o_ref, *, H, W, cb, use_bf16, packed):
    # x_ref: (1, Cin, H*W)   input block, spatial on the 128-lane axis
    # w_ref: (4, cb, Cin)    weight block, tap-major rows (dy, dx)
    # o_ref: packed -> (1, cb, 2H, W) uint32   (final NCHW bf16 layout)
    #        slab   -> (1, 4, cb, H*W) f32     (validation path)
    hw = H * W
    cin = x_ref.shape[1]

    x = x_ref[0]                                   # (Cin, HW)
    w = w_ref[...].reshape(4 * cb, cin)            # free leading-dim merge
    if use_bf16:
        x = x.astype(jnp.bfloat16)
        w = w.astype(jnp.bfloat16)

    # --- ConvTranspose2d(k=2, s=2, bias=False): ONE MXU matmul per step ---
    # No tap overlap at stride 2 / kernel 2, so the whole conv is a single
    # (4*cb, Cin) @ (Cin, HW) product; the 4 row groups are the 2x2 taps.
    y = jnp.dot(w, x, preferred_element_type=jnp.float32)     # (4*cb, HW)
    y4 = y.reshape(4, cb, hw)                                  # tap, co, hw

    # --- InstanceNorm2d (affine=False): one-pass stats per channel ---
    inv_count = 1.0 / (4.0 * hw)                   # count = (2H)*(2W)
    s = jnp.sum(y4, axis=(0, 2), keepdims=True)                # (1, cb, 1)
    s2 = jnp.sum(y4 * y4, axis=(0, 2), keepdims=True)
    mean = s * inv_count
    var = jnp.maximum(s2 * inv_count - mean * mean, 0.0)       # clamp >= 0
    h = (y4 - mean) * lax.rsqrt(var + IN_EPS)

    # --- LeakyReLU(0.2) ---
    h = jnp.where(h >= 0, h, LEAKY_SLOPE * h)

    if not packed:
        # f32 validation path: lane-dense tap slab, un-interleaved in wrapper.
        o_ref[0] = h.astype(o_ref.dtype)
        return

    # --- Emit final NCHW bf16 layout directly (no extra HBM pass) ---
    # Pack the two dx taps of each output pixel pair into one u32 word:
    # low 16 bits = column 2j (dx=0), high 16 bits = column 2j+1 (dx=1).
    bits = _f32_to_bf16_bits(h)                    # (4, cb, HW) uint32
    row_dy0 = bits[0] | (bits[1] << 16)            # taps (0,0) | (0,1)
    row_dy1 = bits[2] | (bits[3] << 16)            # taps (1,0) | (1,1)

    # dy placement is plain row indexing: output row 2i (+dy), word column j.
    # H is small & static here; for very large H switch to a spatial grid axis
    # (see TODO at top) so this stays a handful of wide stores.
    for i in range(H):
        src = slice(i * W, (i + 1) * W)
        o_ref[0, :, 2 * i, :] = row_dy0[:, src]
        o_ref[0, :, 2 * i + 1, :] = row_dy1[:, src]


def _choose_cout_block(cout, hw, n_batch, budget_bytes=12 * 1024 * 1024):
    """Largest multiple-of-8 divisor of Cout whose per-step footprint fits a
    VMEM budget; keeps >= 2 grid steps when possible (2 TensorCores on v7x)."""
    divisors = [d for d in range(8, cout + 1, 8) if cout % d == 0]
    cb = divisors[0]
    for d in sorted(divisors, reverse=True):
        # double-buffered packed-u32 output block + ~3 f32 temps of the tile
        need = 2 * (d * 2 * hw * 4) + 3 * (4 * d * hw * 4)
        if need <= budget_bytes:
            cb = d
            break
    if n_batch * (cout // cb) < 2:
        smaller = [d for d in divisors if d <= cout // 2]
        if smaller:
            cb = max(smaller)
    return cb


def transpose_conv_block(x_nchw, w_pt, *, out_dtype=jnp.bfloat16,
                         use_bf16=False):
    """Forward pass of TransposeConvBlock.

    x_nchw: (N, Cin, H, W)
    w_pt:   (Cin, Cout, 2, 2)  (PyTorch ConvTranspose2d weight layout)
    returns (N, Cout, 2H, 2W) in `out_dtype` (bf16 default, f32 = exact path).
    """
    N, Cin, H, W = x_nchw.shape
    Cout = w_pt.shape[1]
    HW = H * W
    assert Cout % 8 == 0, "Cout must be a multiple of 8 (sublane alignment)"

    # Input: free reshape of contiguous NCHW; spatial lands on the lane axis.
    x_flat = x_nchw.reshape(N, Cin, HW)

    # Weights: pre-shape ONCE to (tap, co, ci), tap = dy*2 + dx.
    w3 = jnp.transpose(w_pt, (2, 3, 1, 0)).reshape(4, Cout, Cin)
    if use_bf16:
        w3 = w3.astype(jnp.bfloat16)   # bf16 MXU operands are fine on v5e too

    cb = _choose_cout_block(Cout, HW, N)
    grid = (N, Cout // cb)             # batch purely on the grid (no unroll)

    cparams = pltpu.CompilerParams(
        dimension_semantics=("parallel", "parallel"),
        vmem_limit_bytes=48 * 1024 * 1024,
    )
    in_specs = [
        pl.BlockSpec((1, Cin, HW), lambda n, c: (n, 0, 0)),
        pl.BlockSpec((4, cb, Cin), lambda n, c: (0, c, 0)),
    ]

    packed = jnp.dtype(out_dtype) == jnp.dtype(jnp.bfloat16)
    kernel = functools.partial(_tconv_kernel, H=H, W=W, cb=cb,
                               use_bf16=use_bf16, packed=packed)

    if packed:
        out_u32 = pl.pallas_call(
            kernel,
            out_shape=jax.ShapeDtypeStruct((N, Cout, 2 * H, W), jnp.uint32),
            grid_spec=pltpu.PrefetchScalarGridSpec(
                num_scalar_prefetch=0,
                grid=grid,
                in_specs=in_specs,
                out_specs=pl.BlockSpec((1, cb, 2 * H, W),
                                       lambda n, c: (n, c, 0, 0)),
            ),
            compiler_params=cparams,
        )(x_flat, w3)
        # Each u32 word already holds the two adjacent bf16 output columns in
        # memory order, so reinterpreting the buffer is metadata-only: no
        # extra HBM pass over the (dominant) output byte stream.
        out = lax.bitcast_convert_type(out_u32, jnp.bfloat16)  # (N,C,2H,W,2)
        return out.reshape(N, Cout, 2 * H, 2 * W)

    # Exact f32 validation path: lane-dense tap slab + one wrapper transpose.
    out_slab = pl.pallas_call(
        kernel,
        out_shape=jax.ShapeDtypeStruct((N, 4, Cout, HW), jnp.float32),
        grid_spec=pltpu.PrefetchScalarGridSpec(
            num_scalar_prefetch=0,
            grid=grid,
            in_specs=in_specs,
            out_specs=pl.BlockSpec((1, 4, cb, HW),
                                   lambda n, c: (n, 0, c, 0)),
        ),
        compiler_params=cparams,
    )(x_flat, w3)
    out = out_slab.reshape(N, 2, 2, Cout, H, W)
    out = jnp.transpose(out, (0, 3, 4, 1, 5, 2))      # (N, Cout, H, dy, W, dx)
    return out.reshape(N, Cout, 2 * H, 2 * W).astype(out_dtype)


def transpose_conv_block_ref(x_nchw, w_pt):
    """Pure-JAX reference of the same forward pass (eval mode, f32)."""
    x = x_nchw.astype(jnp.float32)
    w = w_pt.astype(jnp.float32)
    N, Cin, H, W = x.shape
    Cout = w.shape[1]
    # out[n, o, 2i+dy, 2j+dx] = sum_c x[n, c, i, j] * w[c, o, dy, dx]
    y = jnp.einsum('ncij,cokl->noikjl', x, w)
    y = y.reshape(N, Cout, 2 * H, 2 * W)
    mean = jnp.mean(y, axis=(2, 3), keepdims=True)
    var = jnp.mean((y - mean) ** 2, axis=(2, 3), keepdims=True)
    h = (y - mean) * lax.rsqrt(var + IN_EPS)
    return jnp.where(h >= 0, h, LEAKY_SLOPE * h)


if __name__ == "__main__":
    N, Cin, Cout, H, W = 2, 4, 8, 16, 16

    key = jax.random.PRNGKey(0)
    kx, kw = jax.random.split(key)
    x = jax.random.normal(kx, (N, Cin, H, W), jnp.float32)
    # PyTorch ConvTranspose2d weight layout: (in_chans, out_chans, kH, kW)
    w = 0.1 * jax.random.normal(kw, (Cin, Cout, 2, 2), jnp.float32)

    ref = jax.block_until_ready(transpose_conv_block_ref(x, w))

    # 1) Default path: bf16 output emitted in final NCHW layout in-kernel.
    out = jax.block_until_ready(transpose_conv_block(x, w))
    assert out.shape == (N, Cout, 2 * H, 2 * W), out.shape
    assert out.dtype == jnp.bfloat16, out.dtype
    assert jnp.allclose(out.astype(jnp.float32), ref, atol=3e-2, rtol=3e-2), \
        float(jnp.max(jnp.abs(out.astype(jnp.float32) - ref)))

    # 2) bf16 MXU operands (valid on v5e/v6e/v7x); element-wise math stays f32.
    out_b = jax.block_until_ready(transpose_conv_block(x, w, use_bf16=True))
    assert jnp.allclose(out_b.astype(jnp.float32), ref, atol=7.5e-2,
                        rtol=7.5e-2), \
        float(jnp.max(jnp.abs(out_b.astype(jnp.float32) - ref)))

    # 3) Exact f32 validation path (slab + wrapper un-interleave).
    out_f32 = jax.block_until_ready(
        transpose_conv_block(x, w, out_dtype=jnp.float32))
    assert out_f32.dtype == jnp.float32
    assert jnp.allclose(out_f32, ref, atol=1e-4, rtol=1e-4), \
        float(jnp.max(jnp.abs(out_f32 - ref)))

    print("KERNEL_OK")
</pallas_src>

<mosaic_0001>
module attributes {stable_mosaic.version = 11 : i64} {
  func.func @_tconv_kernel(%arg0: i32, %arg1: i32, %arg2: memref<1x4x256xf32, #tpu.memory_space<vmem>>, %arg3: memref<4x8x4xf32, #tpu.memory_space<vmem>>, %arg4: memref<1x8x32x16xi32, #tpu.memory_space<vmem>>) attributes {dimension_semantics = [#tpu.dimension_semantics<parallel>, #tpu.dimension_semantics<parallel>], iteration_bounds = array<i64: 2, 1>, scalar_prefetch = 0 : i64, scratch_operands = 0 : i64, tpu.core_type = #tpu.core_type<tc>, window_params = [{transform_indices = @transform_0, window_bounds = array<i64: 1, 4, 256>}, {transform_indices = @transform_1, window_bounds = array<i64: 4, 8, 4>}, {transform_indices = @transform_2, window_bounds = array<i64: 1, 8, 32, 16>}]} {
    %c0 = arith.constant 0 : index
    %c0_0 = arith.constant 0 : index
    %c0_1 = arith.constant 0 : index
    %0 = vector.load %arg2[%c0, %c0_0, %c0_1] : memref<1x4x256xf32, #tpu.memory_space<vmem>>, vector<1x4x256xf32>
    %1 = vector.shape_cast %0 : vector<1x4x256xf32> to vector<4x256xf32>
    %c0_2 = arith.constant 0 : index
    %c0_3 = arith.constant 0 : index
    %c0_4 = arith.constant 0 : index
    %2 = vector.load %arg3[%c0_2, %c0_3, %c0_4] : memref<4x8x4xf32, #tpu.memory_space<vmem>>, vector<4x8x4xf32>
    %3 = vector.shape_cast %2 : vector<4x8x4xf32> to vector<32x4xf32>
    %cst = arith.constant dense<0.000000e+00> : vector<32x256xf32>
    %4 = tpu.matmul %3, %1, %cst {dimension_numbers = #tpu.dot_dimension_numbers<[1], [0], [0], [1], [0, 0, 1, 1], [], []>} : vector<32x4xf32>, vector<4x256xf32>, vector<32x256xf32> -> vector<32x256xf32>
    %5 = vector.shape_cast %4 : vector<32x256xf32> to vector<4x8x256xf32>
    %cst_5 = arith.constant dense<0.000000e+00> : vector<8xf32>
    %6 = vector.multi_reduction <add>, %5, %cst_5 [0, 2] : vector<4x8x256xf32> to vector<8xf32>
    %7 = vector.shape_cast %6 : vector<8xf32> to vector<1x8x1xf32>
    %8 = arith.mulf %5, %5 : vector<4x8x256xf32>
    %cst_6 = arith.constant dense<0.000000e+00> : vector<8xf32>
    %9 = vector.multi_reduction <add>, %8, %cst_6 [0, 2] : vector<4x8x256xf32> to vector<8xf32>
    %10 = vector.shape_cast %9 : vector<8xf32> to vector<1x8x1xf32>
    %cst_7 = arith.constant 9.765625E-4 : f32
    %11 = vector.broadcast %cst_7 : f32 to vector<1x8x1xf32>
    %12 = arith.mulf %7, %11 : vector<1x8x1xf32>
    %cst_8 = arith.constant 9.765625E-4 : f32
    %13 = vector.broadcast %cst_8 : f32 to vector<1x8x1xf32>
    %14 = arith.mulf %10, %13 : vector<1x8x1xf32>
    %15 = arith.mulf %12, %12 : vector<1x8x1xf32>
    %16 = arith.subf %14, %15 : vector<1x8x1xf32>
    %cst_9 = arith.constant 0.000000e+00 : f32
    %17 = vector.broadcast %cst_9 : f32 to vector<1x8x1xf32>
    %18 = arith.maximumf %16, %17 : vector<1x8x1xf32>
    %19 = vector.broadcast %12 : vector<1x8x1xf32> to vector<4x8x256xf32>
    %20 = arith.subf %5, %19 : vector<4x8x256xf32>
    %cst_10 = arith.constant 9.99999974E-6 : f32
    %21 = vector.broadcast %cst_10 : f32 to vector<1x8x1xf32>
    %22 = arith.addf %18, %21 : vector<1x8x1xf32>
    %23 = math.rsqrt %22 : vector<1x8x1xf32>
    %24 = vector.broadcast %23 : vector<1x8x1xf32> to vector<4x8x256xf32>
    %25 = arith.mulf %20, %24 : vector<4x8x256xf32>
    %cst_11 = arith.constant 0.000000e+00 : f32
    %26 = vector.broadcast %cst_11 : f32 to vector<4x8x256xf32>
    %27 = arith.cmpf oge, %25, %26 : vector<4x8x256xf32>
    %cst_12 = arith.constant 2.000000e-01 : f32
    %28 = vector.broadcast %cst_12 : f32 to vector<4x8x256xf32>
    %29 = arith.mulf %28, %25 : vector<4x8x256xf32>
    %30 = arith.select %27, %25, %29 : vector<4x8x256xi1>, vector<4x8x256xf32>
    %31 = tpu.bitcast %30 : vector<4x8x256xf32> -> vector<4x8x256xi32>
    %c16_i32 = arith.constant 16 : i32
    %32 = vector.broadcast %c16_i32 : i32 to vector<4x8x256xi32>
    %33 = arith.shrui %31, %32 : vector<4x8x256xi32>
    %c1_i32 = arith.constant 1 : i32
    %34 = vector.broadcast %c1_i32 : i32 to vector<4x8x256xi32>
    %35 = arith.andi %33, %34 : vector<4x8x256xi32>
    %c32767_i32 = arith.constant 32767 : i32
    %36 = vector.broadcast %c32767_i32 : i32 to vector<4x8x256xi32>
    %37 = arith.addi %31, %36 : vector<4x8x256xi32>
    %38 = arith.addi %37, %35 : vector<4x8x256xi32>
    %c16_i32_13 = arith.constant 16 : i32
    %39 = vector.broadcast %c16_i32_13 : i32 to vector<4x8x256xi32>
    %40 = arith.shrui %38, %39 : vector<4x8x256xi32>
    %41 = vector.extract_strided_slice %40 {offsets = [0, 0, 0], sizes = [1, 8, 256], strides = [1, 1, 1]} : vector<4x8x256xi32> to vector<1x8x256xi32>
    %42 = vector.shape_cast %41 : vector<1x8x256xi32> to vector<8x256xi32>
    %43 = vector.extract_strided_slice %40 {offsets = [1, 0, 0], sizes = [1, 8, 256], strides = [1, 1, 1]} : vector<4x8x256xi32> to vector<1x8x256xi32>
    %44 = vector.shape_cast %43 : vector<1x8x256xi32> to vector<8x256xi32>
    %c16_i32_14 = arith.constant 16 : i32
    %45 = vector.broadcast %c16_i32_14 : i32 to vector<8x256xi32>
    %46 = arith.shli %44, %45 : vector<8x256xi32>
    %47 = arith.ori %42, %46 : vector<8x256xi32>
    %48 = vector.extract_strided_slice %40 {offsets = [2, 0, 0], sizes = [1, 8, 256], strides = [1, 1, 1]} : vector<4x8x256xi32> to vector<1x8x256xi32>
    %49 = vector.shape_cast %48 : vector<1x8x256xi32> to vector<8x256xi32>
    %50 = vector.extract_strided_slice %40 {offsets = [3, 0, 0], sizes = [1, 8, 256], strides = [1, 1, 1]} : vector<4x8x256xi32> to vector<1x8x256xi32>
    %51 = vector.shape_cast %50 : vector<1x8x256xi32> to vector<8x256xi32>
    %c16_i32_15 = arith.constant 16 : i32
    %52 = vector.broadcast %c16_i32_15 : i32 to vector<8x256xi32>
    %53 = arith.shli %51, %52 : vector<8x256xi32>
    %54 = arith.ori %49, %53 : vector<8x256xi32>
    %55 = vector.extract_strided_slice %47 {offsets = [0, 0], sizes = [8, 16], strides = [1, 1]} : vector<8x256xi32> to vector<8x16xi32>
    %c0_16 = arith.constant 0 : index
    %c0_17 = arith.constant 0 : index
    %c0_18 = arith.constant 0 : index
    %c0_19 = arith.constant 0 : index
    %56 = vector.load %arg4[%c0_16, %c0_17, %c0_18, %c0_19] : memref<1x8x32x16xi32, #tpu.memory_space<vmem>>, vector<1x8x1x16xi32>
    %57 = vector.shape_cast %56 : vector<1x8x1x16xi32> to vector<8x16xi32>
    %58 = vector.shape_cast %55 : vector<8x16xi32> to vector<1x8x1x16xi32>
    tpu.vector_store %arg4[%c0_16, %c0_17, %c0_18, %c0_19], %58 {strides = array<i32>} : memref<1x8x32x16xi32, #tpu.memory_space<vmem>>, vector<1x8x1x16xi32>,
    %59 = vector.extract_strided_slice %54 {offsets = [0, 0], sizes = [8, 16], strides = [1, 1]} : vector<8x256xi32> to vector<8x16xi32>
    %c0_20 = arith.constant 0 : index
    %c0_21 = arith.constant 0 : index
    %c1 = arith.constant 1 : index
    %c0_22 = arith.constant 0 : index
    %60 = vector.load %arg4[%c0_20, %c0_21, %c1, %c0_22] : memref<1x8x32x16xi32, #tpu.memory_space<vmem>>, vector<1x8x1x16xi32>
    %61 = vector.shape_cast %60 : vector<1x8x1x16xi32> to vector<8x16xi32>
    %62 = vector.shape_cast %59 : vector<8x16xi32> to vector<1x8x1x16xi32>
    tpu.vector_store %arg4[%c0_20, %c0_21, %c1, %c0_22], %62 {strides = array<i32>} : memref<1x8x32x16xi32, #tpu.memory_space<vmem>>, vector<1x8x1x16xi32>,
    %63 = vector.extract_strided_slice %47 {offsets = [0, 16], sizes = [8, 16], strides = [1, 1]} : vector<8x256xi32> to vector<8x16xi32>
    %c0_23 = arith.constant 0 : index
    %c0_24 = arith.constant 0 : index
    %c2 = arith.constant 2 : index
    %c0_25 = arith.constant 0 : index
    %64 = vector.load %arg4[%c0_23, %c0_24, %c2, %c0_25] : memref<1x8x32x16xi32, #tpu.memory_space<vmem>>, vector<1x8x1x16xi32>
    %65 = vector.shape_cast %64 : vector<1x8x1x16xi32> to vector<8x16xi32>
    %66 = vector.shape_cast %63 : vector<8x16xi32> to vector<1x8x1x16xi32>
    tpu.vector_store %arg4[%c0_23, %c0_24, %c2, %c0_25], %66 {strides = array<i32>} : memref<1x8x32x16xi32, #tpu.memory_space<vmem>>, vector<1x8x1x16xi32>,
    %67 = vector.extract_strided_slice %54 {offsets = [0, 16], sizes = [8, 16], strides = [1, 1]} : vector<8x256xi32> to vector<8x16xi32>
    %c0_26 = arith.constant 0 : index
    %c0_27 = arith.constant 0 : index
    %c3 = arith.constant 3 : index
    %c0_28 = arith.constant 0 : index
    %68 = vector.load %arg4[%c0_26, %c0_27, %c3, %c0_28] : memref<1x8x32x16xi32, #tpu.memory_space<vmem>>, vector<1x8x1x16xi32>
    %69 = vector.shape_cast %68 : vector<1x8x1x16xi32> to vector<8x16xi32>
    %70 = vector.shape_cast %67 : vector<8x16xi32> to vector<1x8x1x16xi32>
    tpu.vector_store %arg4[%c0_26, %c0_27, %c3, %c0_28], %70 {strides = array<i32>} : memref<1x8x32x16xi32, #tpu.memory_space<vmem>>, vector<1x8x1x16xi32>,
    %71 = vector.extract_strided_slice %47 {offsets = [0, 32], sizes = [8, 16], strides = [1, 1]} : vector<8x256xi32> to vector<8x16xi32>
    %c0_29 = arith.constant 0 : index
    %c0_30 = arith.constant 0 : index
    %c4 = arith.constant 4 : index
    %c0_31 = arith.constant 0 : index
    %72 = vector.load %arg4[%c0_29, %c0_30, %c4, %c0_31] : memref<1x8x32x16xi32, #tpu.memory_space<vmem>>, vector<1x8x1x16xi32>
    %73 = vector.shape_cast %72 : vector<1x8x1x16xi32> to vector<8x16xi32>
    %74 = vector.shape_cast %71 : vector<8x16xi32> to vector<1x8x1x16xi32>
    tpu.vector_store %arg4[%c0_29, %c0_30, %c4, %c0_31], %74 {strides = array<i32>} : memref<1x8x32x16xi32, #tpu.memory_space<vmem>>, vector<1x8x1x16xi32>,
    %75 = vector.extract_strided_slice %54 {offsets = [0, 32], sizes = [8, 16], strides = [1, 1]} : vector<8x256xi32> to vector<8x16xi32>
    %c0_32 = arith.constant 0 : index
    %c0_33 = arith.constant 0 : index
    %c5 = arith.constant 5 : index
    %c0_34 = arith.constant 0 : index
    %76 = vector.load %arg4[%c0_32, %c0_33, %c5, %c0_34] : memref<1x8x32x16xi32, #tpu.memory_space<vmem>>, vector<1x8x1x16xi32>
    %77 = vector.shape_cast %76 : vector<1x8x1x16xi32> to vector<8x16xi32>
    %78 = vector.shape_cast %75 : vector<8x16xi32> to vector<1x8x1x16xi32>
    tpu.vector_store %arg4[%c0_32, %c0_33, %c5, %c0_34], %78 {strides = array<i32>} : memref<1x8x32x16xi32, #tpu.memory_space<vmem>>, vector<1x8x1x16xi32>,
    %79 = vector.extract_strided_slice %47 {offsets = [0, 48], sizes = [8, 16], strides = [1, 1]} : vector<8x256xi32> to vector<8x16xi32>
    %c0_35 = arith.constant 0 : index
    %c0_36 = arith.constant 0 : index
    %c6 = arith.constant 6 : index
    %c0_37 = arith.constant 0 : index
    %80 = vector.load %arg4[%c0_35, %c0_36, %c6, %c0_37] : memref<1x8x32x16xi32, #tpu.memory_space<vmem>>, vector<1x8x1x16xi32>
    %81 = vector.shape_cast %80 : vector<1x8x1x16xi32> to vector<8x16xi32>
    %82 = vector.shape_cast %79 : vector<8x16xi32> to vector<1x8x1x16xi32>
    tpu.vector_store %arg4[%c0_35, %c0_36, %c6, %c0_37], %82 {strides = array<i32>} : memref<1x8x32x16xi32, #tpu.memory_space<vmem>>, vector<1x8x1x16xi32>,
    %83 = vector.extract_strided_slice %54 {offsets = [0, 48], sizes = [8, 16], strides = [1, 1]} : vector<8x256xi32> to vector<8x16xi32>
    %c0_38 = arith.constant 0 : index
    %c0_39 = arith.constant 0 : index
    %c7 = arith.constant 7 : index
    %c0_40 = arith.constant 0 : index
    %84 = vector.load %arg4[%c0_38, %c0_39, %c7, %c0_40] : memref<1x8x32x16xi32, #tpu.memory_space<vmem>>, vector<1x8x1x16xi32>
    %85 = vector.shape_cast %84 : vector<1x8x1x16xi32> to vector<8x16xi32>
    %86 = vector.shape_cast %83 : vector<8x16xi32> to vector<1x8x1x16xi32>
    tpu.vector_store %arg4[%c0_38, %c0_39, %c7, %c0_40], %86 {strides = array<i32>} : memref<1x8x32x16xi32, #tpu.memory_space<vmem>>, vector<1x8x1x16xi32>,
    %87 = vector.extract_strided_slice %47 {offsets = [0, 64], sizes = [8, 16], strides = [1, 1]} : vector<8x256xi32> to vector<8x16xi32>
    %c0_41 = arith.constant 0 : index
    %c0_42 = arith.constant 0 : index
    %c8 = arith.constant 8 : index
    %c0_43 = arith.constant 0 : index
    %88 = vector.load %arg4[%c0_41, %c0_42, %c8, %c0_43] : memref<1x8x32x16xi32, #tpu.memory_space<vmem>>, vector<1x8x1x16xi32>
    %89 = vector.shape_cast %88 : vector<1x8x1x16xi32> to vector<8x16xi32>
    %90 = vector.shape_cast %87 : vector<8x16xi32> to vector<1x8x1x16xi32>
    tpu.vector_store %arg4[%c0_41, %c0_42, %c8, %c0_43], %90 {strides = array<i32>} : memref<1x8x32x16xi32, #tpu.memory_space<vmem>>, vector<1x8x1x16xi32>,
    %91 = vector.extract_strided_slice %54 {offsets = [0, 64], sizes = [8, 16], strides = [1, 1]} : vector<8x256xi32> to vector<8x16xi32>
    %c0_44 = arith.constant 0 : index
    %c0_45 = arith.constant 0 : index
    %c9 = arith.constant 9 : index
    %c0_46 = arith.constant 0 : index
    %92 = vector.load %arg4[%c0_44, %c0_45, %c9, %c0_46] : memref<1x8x32x16xi32, #tpu.memory_space<vmem>>, vector<1x8x1x16xi32>
    %93 = vector.shape_cast %92 : vector<1x8x1x16xi32> to vector<8x16xi32>
    %94 = vector.shape_cast %91 : vector<8x16xi32> to vector<1x8x1x16xi32>
    tpu.vector_store %arg4[%c0_44, %c0_45, %c9, %c0_46], %94 {strides = array<i32>} : memref<1x8x32x16xi32, #tpu.memory_space<vmem>>, vector<1x8x1x16xi32>,
    %95 = vector.extract_strided_slice %47 {offsets = [0, 80], sizes = [8, 16], strides = [1, 1]} : vector<8x256xi32> to vector<8x16xi32>
    %c0_47 = arith.constant 0 : index
    %c0_48 = arith.constant 0 : index
    %c10 = arith.constant 10 : index
    %c0_49 = arith.constant 0 : index
    %96 = vector.load %arg4[%c0_47, %c0_48, %c10, %c0_49] : memref<1x8x32x16xi32, #tpu.memory_space<vmem>>, vector<1x8x1x16xi32>
    %97 = vector.shape_cast %96 : vector<1x8x1x16xi32> to vector<8x16xi32>
    %98 = vector.shape_cast %95 : vector<8x16xi32> to vector<1x8x1x16xi32>
    tpu.vector_store %arg4[%c0_47, %c0_48, %c10, %c0_49], %98 {strides = array<i32>} : memref<1x8x32x16xi32, #tpu.memory_space<vmem>>, vector<1x8x1x16xi32>,
    %99 = vector.extract_strided_slice %54 {offsets = [0, 80], sizes = [8, 16], strides = [1, 1]} : vector<8x256xi32> to vector<8x16xi32>
    %c0_50 = arith.constant 0 : index
    %c0_51 = arith.constant 0 : index
    %c11 = arith.constant 11 : index
    %c0_52 = arith.constant 0 : index
    %100 = vector.load %arg4[%c0_50, %c0_51, %c11, %c0_52] : memref<1x8x32x16xi32, #tpu.memory_space<vmem>>, vector<1x8x1x16xi32>
    %101 = vector.shape_cast %100 : vector<1x8x1x16xi32> to vector<8x16xi32>
    %102 = vector.shape_cast %99 : vector<8x16xi32> to vector<1x8x1x16xi32>
    tpu.vector_store %arg4[%c0_50, %c0_51, %c11, %c0_52], %102 {strides = array<i32>} : memref<1x8x32x16xi32, #tpu.memory_space<vmem>>, vector<1x8x1x16xi32>,
    %103 = vector.extract_strided_slice %47 {offsets = [0, 96], sizes = [8, 16], strides = [1, 1]} : vector<8x256xi32> to vector<8x16xi32>
    %c0_53 = arith.constant 0 : index
    %c0_54 = arith.constant 0 : index
    %c12 = arith.constant 12 : index
    %c0_55 = arith.constant 0 : index
    %104 = vector.load %arg4[%c0_53, %c0_54, %c12, %c0_55] : memref<1x8x32x16xi32, #tpu.memory_space<vmem>>, vector<1x8x1x16xi32>
    %105 = vector.shape_cast %104 : vector<1x8x1x16xi32> to vector<8x16xi32>
    %106 = vector.shape_cast %103 : vector<8x16xi32> to vector<1x8x1x16xi32>
    tpu.vector_store %arg4[%c0_53, %c0_54, %c12, %c0_55], %106 {strides = array<i32>} : memref<1x8x32x16xi32, #tpu.memory_space<vmem>>, vector<1x8x1x16xi32>,
    %107 = vector.extract_strided_slice %54 {offsets = [0, 96], sizes = [8, 16], strides = [1, 1]} : vector<8x256xi32> to vector<8x16xi32>
    %c0_56 = arith.constant 0 : index
    %c0_57 = arith.constant 0 : index
    %c13 = arith.constant 13 : index
    %c0_58 = arith.constant 0 : index
    %108 = vector.load %arg4[%c0_56, %c0_57, %c13, %c0_58] : memref<1x8x32x16xi32, #tpu.memory_space<vmem>>, vector<1x8x1x16xi32>
    %109 = vector.shape_cast %108 : vector<1x8x1x16xi32> to vector<8x16xi32>
    %110 = vector.shape_cast %107 : vector<8x16xi32> to vector<1x8x1x16xi32>
    tpu.vector_store %arg4[%c0_56, %c0_57, %c13, %c0_58], %110 {strides = array<i32>} : memref<1x8x32x16xi32, #tpu.memory_space<vmem>>, vector<1x8x1x16xi32>,
    %111 = vector.extract_strided_slice %47 {offsets = [0, 112], sizes = [8, 16], strides = [1, 1]} : vector<8x256xi32> to vector<8x16xi32>
    %c0_59 = arith.constant 0 : index
    %c0_60 = arith.constant 0 : index
    %c14 = arith.constant 14 : index
    %c0_61 = arith.constant 0 : index
    %112 = vector.load %arg4[%c0_59, %c0_60, %c14, %c0_61] : memref<1x8x32x16xi32, #tpu.memory_space<vmem>>, vector<1x8x1x16xi32>
    %113 = vector.shape_cast %112 : vector<1x8x1x16xi32> to vector<8x16xi32>
    %114 = vector.shape_cast %111 : vector<8x16xi32> to vector<1x8x1x16xi32>
    tpu.vector_store %arg4[%c0_59, %c0_60, %c14, %c0_61], %114 {strides = array<i32>} : memref<1x8x32x16xi32, #tpu.memory_space<vmem>>, vector<1x8x1x16xi32>,
    %115 = vector.extract_strided_slice %54 {offsets = [0, 112], sizes = [8, 16], strides = [1, 1]} : vector<8x256xi32> to vector<8x16xi32>
    %c0_62 = arith.constant 0 : index
    %c0_63 = arith.constant 0 : index
    %c15 = arith.constant 15 : index
    %c0_64 = arith.constant 0 : index
    %116 = vector.load %arg4[%c0_62, %c0_63, %c15, %c0_64] : memref<1x8x32x16xi32, #tpu.memory_space<vmem>>, vector<1x8x1x16xi32>
    %117 = vector.shape_cast %116 : vector<1x8x1x16xi32> to vector<8x16xi32>
    %118 = vector.shape_cast %115 : vector<8x16xi32> to vector<1x8x1x16xi32>
    tpu.vector_store %arg4[%c0_62, %c0_63, %c15, %c0_64], %118 {strides = array<i32>} : memref<1x8x32x16xi32, #tpu.memory_space<vmem>>, vector<1x8x1x16xi32>,
    %119 = vector.extract_strided_slice %47 {offsets = [0, 128], sizes = [8, 16], strides = [1, 1]} : vector<8x256xi32> to vector<8x16xi32>
    %c0_65 = arith.constant 0 : index
    %c0_66 = arith.constant 0 : index
    %c16 = arith.constant 16 : index
    %c0_67 = arith.constant 0 : index
    %120 = vector.load %arg4[%c0_65, %c0_66, %c16, %c0_67] : memref<1x8x32x16xi32, #tpu.memory_space<vmem>>, vector<1x8x1x16xi32>
    %121 = vector.shape_cast %120 : vector<1x8x1x16xi32> to vector<8x16xi32>
    %122 = vector.shape_cast %119 : vector<8x16xi32> to vector<1x8x1x16xi32>
    tpu.vector_store %arg4[%c0_65, %c0_66, %c16, %c0_67], %122 {strides = array<i32>} : memref<1x8x32x16xi32, #tpu.memory_space<vmem>>, vector<1x8x1x16xi32>,
    %123 = vector.extract_strided_slice %54 {offsets = [0, 128], sizes = [8, 16], strides = [1, 1]} : vector<8x256xi32> to vector<8x16xi32>
    %c0_68 = arith.constant 0 : index
    %c0_69 = arith.constant 0 : index
    %c17 = arith.constant 17 : index
    %c0_70 = arith.constant 0 : index
    %124 = vector.load %arg4[%c0_68, %c0_69, %c17, %c0_70] : memref<1x8x32x16xi32, #tpu.memory_space<vmem>>, vector<1x8x1x16xi32>
    %125 = vector.shape_cast %124 : vector<1x8x1x16xi32> to vector<8x16xi32>
    %126 = vector.shape_cast %123 : vector<8x16xi32> to vector<1x8x1x16xi32>
    tpu.vector_store %arg4[%c0_68, %c0_69, %c17, %c0_70], %126 {strides = array<i32>} : memref<1x8x32x16xi32, #tpu.memory_space<vmem>>, vector<1x8x1x16xi32>,
    %127 = vector.extract_strided_slice %47 {offsets = [0, 144], sizes = [8, 16], strides = [1, 1]} : vector<8x256xi32> to vector<8x16xi32>
    %c0_71 = arith.constant 0 : index
    %c0_72 = arith.constant 0 : index
    %c18 = arith.constant 18 : index
    %c0_73 = arith.constant 0 : index
    %128 = vector.load %arg4[%c0_71, %c0_72, %c18, %c0_73] : memref<1x8x32x16xi32, #tpu.memory_space<vmem>>, vector<1x8x1x16xi32>
    %129 = vector.shape_cast %128 : vector<1x8x1x16xi32> to vector<8x16xi32>
    %130 = vector.shape_cast %127 : vector<8x16xi32> to vector<1x8x1x16xi32>
    tpu.vector_store %arg4[%c0_71, %c0_72, %c18, %c0_73], %130 {strides = array<i32>} : memref<1x8x32x16xi32, #tpu.memory_space<vmem>>, vector<1x8x1x16xi32>,
    %131 = vector.extract_strided_slice %54 {offsets = [0, 144], sizes = [8, 16], strides = [1, 1]} : vector<8x256xi32> to vector<8x16xi32>
    %c0_74 = arith.constant 0 : index
    %c0_75 = arith.constant 0 : index
    %c19 = arith.constant 19 : index
    %c0_76 = arith.constant 0 : index
    %132 = vector.load %arg4[%c0_74, %c0_75, %c19, %c0_76] : memref<1x8x32x16xi32, #tpu.memory_space<vmem>>, vector<1x8x1x16xi32>
    %133 = vector.shape_cast %132 : vector<1x8x1x16xi32> to vector<8x16xi32>
    %134 = vector.shape_cast %131 : vector<8x16xi32> to vector<1x8x1x16xi32>
    tpu.vector_store %arg4[%c0_74, %c0_75, %c19, %c0_76], %134 {strides = array<i32>} : memref<1x8x32x16xi32, #tpu.memory_space<vmem>>, vector<1x8x1x16xi32>,
    %135 = vector.extract_strided_slice %47 {offsets = [0, 160], sizes = [8, 16], strides = [1, 1]} : vector<8x256xi32> to vector<8x16xi32>
    %c0_77 = arith.constant 0 : index
    %c0_78 = arith.constant 0 : index
    %c20 = arith.constant 20 : index
    %c0_79 = arith.constant 0 : index
    %136 = vector.load %arg4[%c0_77, %c0_78, %c20, %c0_79] : memref<1x8x32x16xi32, #tpu.memory_space<vmem>>, vector<1x8x1x16xi32>
    %137 = vector.shape_cast %136 : vector<1x8x1x16xi32> to vector<8x16xi32>
    %138 = vector.shape_cast %135 : vector<8x16xi32> to vector<1x8x1x16xi32>
    tpu.vector_store %arg4[%c0_77, %c0_78, %c20, %c0_79], %138 {strides = array<i32>} : memref<1x8x32x16xi32, #tpu.memory_space<vmem>>, vector<1x8x1x16xi32>,
    %139 = vector.extract_strided_slice %54 {offsets = [0, 160], sizes = [8, 16], strides = [1, 1]} : vector<8x256xi32> to vector<8x16xi32>
    %c0_80 = arith.constant 0 : index
    %c0_81 = arith.constant 0 : index
    %c21 = arith.constant 21 : index
    %c0_82 = arith.constant 0 : index
    %140 = vector.load %arg4[%c0_80, %c0_81, %c21, %c0_82] : memref<1x8x32x16xi32, #tpu.memory_space<vmem>>, vector<1x8x1x16xi32>
    %141 = vector.shape_cast %140 : vector<1x8x1x16xi32> to vector<8x16xi32>
    %142 = vector.shape_cast %139 : vector<8x16xi32> to vector<1x8x1x16xi32>
    tpu.vector_store %arg4[%c0_80, %c0_81, %c21, %c0_82], %142 {strides = array<i32>} : memref<1x8x32x16xi32, #tpu.memory_space<vmem>>, vector<1x8x1x16xi32>,
    %143 = vector.extract_strided_slice %47 {offsets = [0, 176], sizes = [8, 16], strides = [1, 1]} : vector<8x256xi32> to vector<8x16xi32>
    %c0_83 = arith.constant 0 : index
    %c0_84 = arith.constant 0 : index
    %c22 = arith.constant 22 : index
    %c0_85 = arith.constant 0 : index
    %144 = vector.load %arg4[%c0_83, %c0_84, %c22, %c0_85] : memref<1x8x32x16xi32, #tpu.memory_space<vmem>>, vector<1x8x1x16xi32>
    %145 = vector.shape_cast %144 : vector<1x8x1x16xi32> to vector<8x16xi32>
    %146 = vector.shape_cast %143 : vector<8x16xi32> to vector<1x8x1x16xi32>
    tpu.vector_store %arg4[%c0_83, %c0_84, %c22, %c0_85], %146 {strides = array<i32>} : memref<1x8x32x16xi32, #tpu.memory_space<vmem>>, vector<1x8x1x16xi32>,
    %147 = vector.extract_strided_slice %54 {offsets = [0, 176], sizes = [8, 16], strides = [1, 1]} : vector<8x256xi32> to vector<8x16xi32>
    %c0_86 = arith.constant 0 : index
    %c0_87 = arith.constant 0 : index
    %c23 = arith.constant 23 : index
    %c0_88 = arith.constant 0 : index
    %148 = vector.load %arg4[%c0_86, %c0_87, %c23, %c0_88] : memref<1x8x32x16xi32, #tpu.memory_space<vmem>>, vector<1x8x1x16xi32>
    %149 = vector.shape_cast %148 : vector<1x8x1x16xi32> to vector<8x16xi32>
    %150 = vector.shape_cast %147 : vector<8x16xi32> to vector<1x8x1x16xi32>
    tpu.vector_store %arg4[%c0_86, %c0_87, %c23, %c0_88], %150 {strides = array<i32>} : memref<1x8x32x16xi32, #tpu.memory_space<vmem>>, vector<1x8x1x16xi32>,
    %151 = vector.extract_strided_slice %47 {offsets = [0, 192], sizes = [8, 16], strides = [1, 1]} : vector<8x256xi32> to vector<8x16xi32>
    %c0_89 = arith.constant 0 : index
    %c0_90 = arith.constant 0 : index
    %c24 = arith.constant 24 : index
    %c0_91 = arith.constant 0 : index
    %152 = vector.load %arg4[%c0_89, %c0_90, %c24, %c0_91] : memref<1x8x32x16xi32, #tpu.memory_space<vmem>>, vector<1x8x1x16xi32>
    %153 = vector.shape_cast %152 : vector<1x8x1x16xi32> to vector<8x16xi32>
    %154 = vector.shape_cast %151 : vector<8x16xi32> to vector<1x8x1x16xi32>
    tpu.vector_store %arg4[%c0_89, %c0_90, %c24, %c0_91], %154 {strides = array<i32>} : memref<1x8x32x16xi32, #tpu.memory_space<vmem>>, vector<1x8x1x16xi32>,
    %155 = vector.extract_strided_slice %54 {offsets = [0, 192], sizes = [8, 16], strides = [1, 1]} : vector<8x256xi32> to vector<8x16xi32>
    %c0_92 = arith.constant 0 : index
    %c0_93 = arith.constant 0 : index
    %c25 = arith.constant 25 : index
    %c0_94 = arith.constant 0 : index
    %156 = vector.load %arg4[%c0_92, %c0_93, %c25, %c0_94] : memref<1x8x32x16xi32, #tpu.memory_space<vmem>>, vector<1x8x1x16xi32>
    %157 = vector.shape_cast %156 : vector<1x8x1x16xi32> to vector<8x16xi32>
    %158 = vector.shape_cast %155 : vector<8x16xi32> to vector<1x8x1x16xi32>
    tpu.vector_store %arg4[%c0_92, %c0_93, %c25, %c0_94], %158 {strides = array<i32>} : memref<1x8x32x16xi32, #tpu.memory_space<vmem>>, vector<1x8x1x16xi32>,
    %159 = vector.extract_strided_slice %47 {offsets = [0, 208], sizes = [8, 16], strides = [1, 1]} : vector<8x256xi32> to vector<8x16xi32>
    %c0_95 = arith.constant 0 : index
    %c0_96 = arith.constant 0 : index
    %c26 = arith.constant 26 : index
    %c0_97 = arith.constant 0 : index
    %160 = vector.load %arg4[%c0_95, %c0_96, %c26, %c0_97] : memref<1x8x32x16xi32, #tpu.memory_space<vmem>>, vector<1x8x1x16xi32>
    %161 = vector.shape_cast %160 : vector<1x8x1x16xi32> to vector<8x16xi32>
    %162 = vector.shape_cast %159 : vector<8x16xi32> to vector<1x8x1x16xi32>
    tpu.vector_store %arg4[%c0_95, %c0_96, %c26, %c0_97], %162 {strides = array<i32>} : memref<1x8x32x16xi32, #tpu.memory_space<vmem>>, vector<1x8x1x16xi32>,
    %163 = vector.extract_strided_slice %54 {offsets = [0, 208], sizes = [8, 16], strides = [1, 1]} : vector<8x256xi32> to vector<8x16xi32>
    %c0_98 = arith.constant 0 : index
    %c0_99 = arith.constant 0 : index
    %c27 = arith.constant 27 : index
    %c0_100 = arith.constant 0 : index
    %164 = vector.load %arg4[%c0_98, %c0_99, %c27, %c0_100] : memref<1x8x32x16xi32, #tpu.memory_space<vmem>>, vector<1x8x1x16xi32>
    %165 = vector.shape_cast %164 : vector<1x8x1x16xi32> to vector<8x16xi32>
    %166 = vector.shape_cast %163 : vector<8x16xi32> to vector<1x8x1x16xi32>
    tpu.vector_store %arg4[%c0_98, %c0_99, %c27, %c0_100], %166 {strides = array<i32>} : memref<1x8x32x16xi32, #tpu.memory_space<vmem>>, vector<1x8x1x16xi32>,
    %167 = vector.extract_strided_slice %47 {offsets = [0, 224], sizes = [8, 16], strides = [1, 1]} : vector<8x256xi32> to vector<8x16xi32>
    %c0_101 = arith.constant 0 : index
    %c0_102 = arith.constant 0 : index
    %c28 = arith.constant 28 : index
    %c0_103 = arith.constant 0 : index
    %168 = vector.load %arg4[%c0_101, %c0_102, %c28, %c0_103] : memref<1x8x32x16xi32, #tpu.memory_space<vmem>>, vector<1x8x1x16xi32>
    %169 = vector.shape_cast %168 : vector<1x8x1x16xi32> to vector<8x16xi32>
    %170 = vector.shape_cast %167 : vector<8x16xi32> to vector<1x8x1x16xi32>
    tpu.vector_store %arg4[%c0_101, %c0_102, %c28, %c0_103], %170 {strides = array<i32>} : memref<1x8x32x16xi32, #tpu.memory_space<vmem>>, vector<1x8x1x16xi32>,
    %171 = vector.extract_strided_slice %54 {offsets = [0, 224], sizes = [8, 16], strides = [1, 1]} : vector<8x256xi32> to vector<8x16xi32>
    %c0_104 = arith.constant 0 : index
    %c0_105 = arith.constant 0 : index
    %c29 = arith.constant 29 : index
    %c0_106 = arith.constant 0 : index
    %172 = vector.load %arg4[%c0_104, %c0_105, %c29, %c0_106] : memref<1x8x32x16xi32, #tpu.memory_space<vmem>>, vector<1x8x1x16xi32>
    %173 = vector.shape_cast %172 : vector<1x8x1x16xi32> to vector<8x16xi32>
    %174 = vector.shape_cast %171 : vector<8x16xi32> to vector<1x8x1x16xi32>
    tpu.vector_store %arg4[%c0_104, %c0_105, %c29, %c0_106], %174 {strides = array<i32>} : memref<1x8x32x16xi32, #tpu.memory_space<vmem>>, vector<1x8x1x16xi32>,
    %175 = vector.extract_strided_slice %47 {offsets = [0, 240], sizes = [8, 16], strides = [1, 1]} : vector<8x256xi32> to vector<8x16xi32>
    %c0_107 = arith.constant 0 : index
    %c0_108 = arith.constant 0 : index
    %c30 = arith.constant 30 : index
    %c0_109 = arith.constant 0 : index
    %176 = vector.load %arg4[%c0_107, %c0_108, %c30, %c0_109] : memref<1x8x32x16xi32, #tpu.memory_space<vmem>>, vector<1x8x1x16xi32>
    %177 = vector.shape_cast %176 : vector<1x8x1x16xi32> to vector<8x16xi32>
    %178 = vector.shape_cast %175 : vector<8x16xi32> to vector<1x8x1x16xi32>
    tpu.vector_store %arg4[%c0_107, %c0_108, %c30, %c0_109], %178 {strides = array<i32>} : memref<1x8x32x16xi32, #tpu.memory_space<vmem>>, vector<1x8x1x16xi32>,
    %179 = vector.extract_strided_slice %54 {offsets = [0, 240], sizes = [8, 16], strides = [1, 1]} : vector<8x256xi32> to vector<8x16xi32>
    %c0_110 = arith.constant 0 : index
    %c0_111 = arith.constant 0 : index
    %c31 = arith.constant 31 : index
    %c0_112 = arith.constant 0 : index
    %180 = vector.load %arg4[%c0_110, %c0_111, %c31, %c0_112] : memref<1x8x32x16xi32, #tpu.memory_space<vmem>>, vector<1x8x1x16xi32>
    %181 = vector.shape_cast %180 : vector<1x8x1x16xi32> to vector<8x16xi32>
    %182 = vector.shape_cast %179 : vector<8x16xi32> to vector<1x8x1x16xi32>
    tpu.vector_store %arg4[%c0_110, %c0_111, %c31, %c0_112], %182 {strides = array<i32>} : memref<1x8x32x16xi32, #tpu.memory_space<vmem>>, vector<1x8x1x16xi32>,
    return
  }
  func.func @transform_0(%arg0: i32, %arg1: i32) -> (i32, i32, i32) {
    %c0_i32 = arith.constant 0 : i32
    %c0_i32_0 = arith.constant 0 : i32
    %c0_i32_1 = arith.constant 0 : i32
    return %arg0, %c0_i32, %c0_i32_0 : i32, i32, i32
  }
  func.func @transform_1(%arg0: i32, %arg1: i32) -> (i32, i32, i32) {
    %c0_i32 = arith.constant 0 : i32
    %c0_i32_0 = arith.constant 0 : i32
    %c0_i32_1 = arith.constant 0 : i32
    return %c0_i32, %arg1, %c0_i32_0 : i32, i32, i32
  }
  func.func @transform_2(%arg0: i32, %arg1: i32) -> (i32, i32, i32, i32) {
    %c0_i32 = arith.constant 0 : i32
    %c0_i32_0 = arith.constant 0 : i32
    %c0_i32_1 = arith.constant 0 : i32
    return %arg0, %arg1, %c0_i32, %c0_i32_0 : i32, i32, i32, i32
  }
}

</mosaic_0001>

<bundles_post_ra>
// kernel: tpu_custom_call.1
= control target key start
LH: loop header
LB: loop body
LE: loop exit
PB: predicated region body
PF: predicated region fallthrough
CT: control target
= control target key end

     0   :  { %s1381_s9 = smov 0   ;;  %s1383_s10 = smov 0   ;;  %s2628_s0 = inlined_call_operand.vmem [shape: f32[2,4,256], index: 0, kind: input, shape index: {}]   ;;  %s2629_s1 = inlined_call_operand.vmem [shape: f32[4,8,4], index: 1, kind: input, shape index: {}]   ;;  %s2630_s2 = inlined_call_operand.vmem [shape: u32[2,8,32,16], index: 2, kind: output, shape index: {}]  }
   0x1   :  { %s1385_s11 = smov 0  }
   0x2 LB: > { %s24_s12 = sadd.s32 1, %s1353_s10  ;;  %p1281_p0 = scmp.ge.s32.totalorder %s1357_s11, 1  ;;  %s1357_s11 = sphi %s1385_s11, %s12_s11   ;;  %s1353_s10 = sphi %s1383_s10, %s2632_s10   ;;  %s1349_s9 = sphi %s1381_s9, %s2631_s9  }
   0x3   : > { %p26_p1 = scmp.ge.s32.totalorder %s24_s12, 2  ;;  %p135_p2 = scmp.lt.s32.totalorder %s1357_s11, 3 }
   0x5   : > { %s2634_s12 = smov (%p26_p1, %s24_s12), 0  ;;  %p136_p3 = pnand %p1281_p0, %p135_p2 }
   0x6   : > { %p166_p4 = scmp.lt.s32.totalorder (!%p136_p3), %s1349_s9, 1  ;;  %s1359_s29 = smov (!%p136_p3), 80  }
   0x7   : > { %139 = sbr.rel (%p136_p3) target bundleno = 1062 (0x426), region = 28  ;;  %s1360_s30 = smov (!%p136_p3), 112  }
   0x8   : > { %s1361_s3 = smov (!%p136_p3), 64   ;;  %s1362_s4 = smov (!%p136_p3), 96  }
   0x9   : > { %s1363_s5 = smov (!%p136_p3), 32   ;;  %s1364_s6 = smov (!%p136_p3), 16  }
   0xa   : > { %s1365_s7 = smov (!%p136_p3), 48  }
   0xc   : > { %s2636_s9 = smov (!%p166_p4, %s1349_s9), 1  ;;  %vm208_vm0 = vcmask 1043456   ;;  %v187_v1 = vld [vmem:[%s2629_s1] sm:$0xff]  ;;  %vm195_vm1 = vcmask 31744   ;;  %v189_v4 = vld [vmem:[%s2629_s1 + $0x10] sm:$0xff]  ;;  %v188_v5 = vld [vmem:[%s2629_s1 + $0x8] sm:$0xff] }
   0xd   : > { %s1298_s13 = sshll.u32 %s2636_s9, 3  ;;  %v190_v6 = vld [vmem:[%s2629_s1 + $0x18] sm:$0xff]  ;;  %s1299_s25 = sshll.u32 %s2636_s9, 8  ;;  %vm416_vm13 = vcmask 122880  }
   0xe   : > { %s170_s16 = scalar_lea.vmem %s2628_s0, %s1298_s13  ;;  %s1437_s28 = scalar_lea.vmem %s2630_s2, %s1299_s25 }
   0xf   : > { %v186_v0 = vld [vmem:[%s170_s16] sm:$0xff] }
  0x10   : > { %192 = vst [vmem:[#allocation1] ss:$2 sm:$0xff] %v186_v0 }
  0x17   : > { %v193_v2 = vld.sshfl [vmem:[#allocation1] sm:$0xff pattern:$0x75316420]  ;;  %v194_v3 = vld.sshfl [vmem:[#allocation1 + $0x8] sm:$0xff pattern:$0x75316420] }
  0x18   : > { %1286 = vmatpush.msk.msra.mxu0 %vm208_vm0, %v193_v2  ;;  %1291 = vmatpush.msk.msra.mxu1 %vm208_vm0, %v194_v3 }
  0x19   : > { %1287 = vmatmul.msk.f32.vlgmr.msra.gmra.mxu0 %vm195_vm1, %v187_v1  ;;  %1292 = vmatmul.msk.f32.vlgmr.msra.gmra.mxu1 %vm195_vm1, %v187_v1 }
  0x1a   : > { %1300 = vmatpush.msk.msra.mxu2 %vm208_vm0, %v193_v2  ;;  %1301 = vmatpush.msk.msra.mxu3 %vm208_vm0, %v194_v3 }
  0x1b   : > { %1289 = vmatmul.msk.f32.vlgmr.msra.gmra.mxu2 %vm195_vm1, %v189_v4  ;;  %1294 = vmatmul.msk.f32.vlgmr.msra.gmra.mxu3 %vm195_vm1, %v189_v4 }
  0x21   : > { %1288 = vmatmul.msk.f32.gmra.mxu0 %vm195_vm1, %v188_v5  ;;  %1293 = vmatmul.msk.f32.gmra.mxu1 %vm195_vm1, %v188_v5 }
  0x23   : > { %1290 = vmatmul.msk.f32.gmra.mxu2 %vm195_vm1, %v190_v6  ;;  %1295 = vmatmul.msk.f32.gmra.mxu3 %vm195_vm1, %v190_v6 }
  0x96   : > { %v230_v7 = vpop.f32.mrf.mxu0  ;;  %v259_v8 = vpop.f32.mrf.mxu1 }
  0x97   : > { %v280_v9 = vmul.f32 %v230_v7, %v230_v7  ;;  %v281_v10 = vmul.f32 %v259_v8, %v259_v8  ;;  %v271_v11 = vadd.f32 %v259_v8, %v230_v7 }
  0x99   : > { %v288_v14 = vadd.f32 %v281_v10, %v280_v9 }
  0x9e   : > { %v233_v12 = vpop.f32.mrf.mxu0  ;;  %v236_v13 = vpop.f32.mrf.mxu2 }
  0x9f   : > { %v272_v15 = vadd.f32 %v271_v11, %v233_v12  ;;  %v282_v16 = vmul.f32 %v233_v12, %v233_v12  ;;  %v262_v17 = vpop.f32.mrf.mxu1  ;;  %v265_v18 = vpop.f32.mrf.mxu3  ;;  %v284_v22 = vmul.f32 %v236_v13, %v236_v13 }
  0xa0   : > { %v283_v19 = vmul.f32 %v262_v17, %v262_v17  ;;  %v285_v28 = vmul.f32 %v265_v18, %v265_v18 }
  0xa1   : > { %v289_v20 = vadd.f32 %v288_v14, %v282_v16  ;;  %v273_v21 = vadd.f32 %v272_v15, %v262_v17 }
  0xa3   : > { %v274_v23 = vadd.f32 %v273_v21, %v236_v13  ;;  %v290_v24 = vadd.f32 %v289_v20, %v283_v19 }
  0xa5   : > { %v291_v25 = vadd.f32 %v290_v24, %v284_v22  ;;  %v275_v26 = vadd.f32 %v274_v23, %v265_v18 }
  0xa6   : > { %v239_v27 = vpop.f32.mrf.mxu2 }
  0xa7   : > { %v276_v29 = vadd.f32 %v275_v26, %v239_v27  ;;  %v268_v30 = vpop.f32.mrf.mxu3  ;;  %v286_v31 = vmul.f32 %v239_v27, %v239_v27  ;;  %v292_v33 = vadd.f32 %v291_v25, %v285_v28 }
  0xa8   : > { %v287_v34 = vmul.f32 %v268_v30, %v268_v30 }
  0xa9   : > { %v277_v32 = vadd.f32 %v276_v29, %v268_v30  ;;  %v293_v35 = vadd.f32 %v292_v33, %v286_v31 }
  0xab   : > { %278 = vadd.xlane.f32.xlu0 %v277_v32  ;;  %v294_v36 = vadd.f32 %v293_v35, %v287_v34 }
  0xb3   : > { %295 = vadd.xlane.f32.xlu0 %v294_v36 }
 0x11e   : > { %v279_v37 = vpop.xlane.xlu0 %278 }
 0x11f   : > { %v297_v38 = vmul.f32 0.0009765625, %v279_v37 }
 0x121   : > { %v299_v40 = vmul.f32 %v297_v38, %v297_v38  ;;  %v302_v50 = vsub.f32 %v230_v7, %v297_v38  ;;  %v303_v52 = vsub.f32 %v259_v8, %v297_v38  ;;  %v304_v53 = vsub.f32 %v233_v12, %v297_v38 }
 0x122   : > { %v305_v54 = vsub.f32 %v262_v17, %v297_v38  ;;  %v306_v55 = vsub.f32 %v236_v13, %v297_v38  ;;  %v307_v56 = vsub.f32 %v265_v18, %v297_v38  ;;  %v308_v57 = vsub.f32 %v239_v27, %v297_v38 }
 0x123   : > { %v309_v58 = vsub.f32 %v268_v30, %v297_v38 }
 0x126   : > { %v296_v39 = vpop.xlane.xlu0 %295 }
 0x127   : > { %v298_v41 = vmul.f32 0.0009765625, %v296_v39 }
 0x129   : > { %v300_v42 = vsub.f32 %v298_v41, %v299_v40 }
 0x12b   : > { %v301_v43 = vmax.f32 %v300_v42, 0.0 }
 0x12d   : > { %v310_v44 = vadd.f32 1e-05, %v301_v43 }
 0x12f   : > { %1333 = vrsqrt.f32 %v310_v44  ;;  %vm317_vm3 = vweird.f32 %v310_v44 }
 0x135   : > { %v1334_v45 = vpop.eup %1333 }
 0x136   : > { %v312_v46 = vmul.f32 %v1334_v45, %v310_v44  ;;  %vm318_vm2 = vweird.f32 %v1334_v45 }
 0x137   : > { %vm319_vm4 = vmor %vm317_vm3, %vm318_vm2 }
 0x138   : > { %v313_v47 = vmul.f32 %v1334_v45, %v312_v46 }
 0x13a   : > { %v314_v48 = vmul.f32 0.5, %v313_v47 }
 0x13c   : > { %v315_v49 = vsub.f32 1.5, %v314_v48 }
 0x13e   : > { %v316_v51 = vmul.f32 %v1334_v45, %v315_v49 }
 0x140   : > { %v320_v59 = vsel %vm319_vm4, %v1334_v45, %v316_v51 }
 0x141   : > { %v321_v60 = vmul.f32 %v320_v59, %v302_v50  ;;  %v322_v61 = vmul.f32 %v320_v59, %v303_v52  ;;  %v323_v62 = vmul.f32 %v320_v59, %v304_v53  ;;  %v324_v63 = vmul.f32 %v320_v59, %v305_v54 }
 0x142   : > { %v325_v0 = vmul.f32 %v320_v59, %v306_v55  ;;  %v326_v1 = vmul.f32 %v320_v59, %v307_v56  ;;  %v327_v2 = vmul.f32 %v320_v59, %v308_v57  ;;  %v328_v3 = vmul.f32 %v320_v59, %v309_v58 }
 0x143   : > { %vm329_vm5 = vcmp.ge.f32.partialorder %v321_v60, 0.0  ;;  %vm330_vm6 = vcmp.ge.f32.partialorder %v322_v61, 0.0  ;;  %vm331_vm7 = vcmp.ge.f32.partialorder %v323_v62, 0.0  ;;  %vm332_vm8 = vcmp.ge.f32.partialorder %v324_v63, 0.0 }
 0x144   : > { %vm333_vm9 = vcmp.ge.f32.partialorder %v325_v0, 0.0  ;;  %vm334_vm10 = vcmp.ge.f32.partialorder %v326_v1, 0.0  ;;  %vm335_vm11 = vcmp.ge.f32.partialorder %v327_v2, 0.0  ;;  %vm336_vm12 = vcmp.ge.f32.partialorder %v328_v3, 0.0 }
 0x145   : > { %v337_v4 = vmul.f32 0.2, %v321_v60  ;;  %v338_v5 = vmul.f32 0.2, %v322_v61  ;;  %v339_v6 = vmul.f32 0.2, %v323_v62 }
 0x146   : > { %v340_v7 = vmul.f32 0.2, %v324_v63  ;;  %v341_v8 = vmul.f32 0.2, %v325_v0  ;;  %v342_v9 = vmul.f32 0.2, %v326_v1 }
 0x147   : > { %v343_v10 = vmul.f32 0.2, %v327_v2  ;;  %v344_v11 = vmul.f32 0.2, %v328_v3  ;;  %v345_v12 = vsel %vm329_vm5, %v321_v60, %v337_v4  ;;  %v346_v13 = vsel %vm330_vm6, %v322_v61, %v338_v5 }
 0x148   : > { %v347_v14 = vsel %vm331_vm7, %v323_v62, %v339_v6  ;;  %v348_v15 = vsel %vm332_vm8, %v324_v63, %v340_v7  ;;  %v349_v16 = vsel %vm333_vm9, %v325_v0, %v341_v8  ;;  %v350_v17 = vsel %vm334_vm10, %v326_v1, %v342_v9 }
 0x149   : > { %v351_v18 = vsel %vm335_vm11, %v327_v2, %v343_v10  ;;  %v352_v19 = vsel %vm336_vm12, %v328_v3, %v344_v11  ;;  %v361_v20 = vshrl.u32 %v345_v12, 16  ;;  %v362_v21 = vshrl.u32 %v346_v13, 16 }
 0x14a   : > { %v363_v22 = vshrl.u32 %v347_v14, 16  ;;  %v364_v23 = vshrl.u32 %v348_v15, 16  ;;  %v365_v24 = vshrl.u32 %v349_v16, 16  ;;  %v366_v25 = vshrl.u32 %v350_v17, 16 }
 0x14b   : > { %v367_v26 = vshrl.u32 %v351_v18, 16  ;;  %v368_v27 = vshrl.u32 %v352_v19, 16  ;;  %v369_v28 = vand.u32 1, %v361_v20  ;;  %v370_v29 = vand.u32 1, %v362_v21 }
 0x14c   : > { %v371_v30 = vand.u32 1, %v363_v22  ;;  %v372_v31 = vand.u32 1, %v364_v23  ;;  %v373_v32 = vand.u32 1, %v365_v24  ;;  %v374_v33 = vand.u32 1, %v366_v25 }
 0x14d   : > { %v375_v34 = vand.u32 1, %v367_v26  ;;  %v376_v35 = vand.u32 1, %v368_v27  ;;  %v377_v36 = vadd.s32 32767, %v345_v12  ;;  %v378_v37 = vadd.s32 32767, %v346_v13 }
 0x14e   : > { %v379_v38 = vadd.s32 32767, %v347_v14  ;;  %v380_v39 = vadd.s32 32767, %v348_v15  ;;  %v381_v40 = vadd.s32 32767, %v349_v16  ;;  %v382_v41 = vadd.s32 32767, %v350_v17 }
 0x14f   : > { %v383_v42 = vadd.s32 32767, %v351_v18  ;;  %v384_v43 = vadd.s32 32767, %v352_v19  ;;  %v385_v44 = vadd.s32 %v377_v36, %v369_v28  ;;  %v386_v45 = vadd.s32 %v378_v37, %v370_v29 }
 0x150   : > { %v387_v46 = vadd.s32 %v379_v38, %v371_v30  ;;  %v388_v47 = vadd.s32 %v380_v39, %v372_v31  ;;  %v389_v48 = vadd.s32 %v381_v40, %v373_v32  ;;  %v390_v49 = vadd.s32 %v382_v41, %v374_v33 }
 0x151   : > { %v391_v50 = vadd.s32 %v383_v42, %v375_v34  ;;  %v392_v51 = vadd.s32 %v384_v43, %v376_v35  ;;  %v393_v56 = vshrl.u32 %v385_v44, 16  ;;  %v394_v57 = vshrl.u32 %v386_v45, 16 }
 0x152   : > { %v395_v52 = vshrl.u32 %v387_v46, 16  ;;  %v396_v53 = vshrl.u32 %v388_v47, 16  ;;  %v397_v60 = vshrl.u32 %v389_v48, 16  ;;  %v398_v61 = vshrl.u32 %v390_v49, 16 }
 0x153   : > { %v399_v54 = vshrl.u32 %v391_v50, 16  ;;  %v400_v55 = vshrl.u32 %v392_v51, 16 }
 0x154   : > { %v401_v58 = vshll.u32 %v395_v52, 16  ;;  %v402_v59 = vshll.u32 %v396_v53, 16 }
 0x155   : > { %v405_v62 = vshll.u32 %v399_v54, 16  ;;  %v406_v63 = vshll.u32 %v400_v55, 16 }
 0x156   : > { %v1439_v0 = vor.u32 %v401_v58, %v393_v56  ;;  %v1441_v1 = vor.u32 %v402_v59, %v394_v57 }
 0x157   : > { %v1443_v2 = vor.u32 %v405_v62, %v397_v60  ;;  %v1445_v3 = vor.u32 %v406_v63, %v398_v61 }
 0x158   : > { %417 = vst.msk [vmem:[%s1437_s28] sm:$0x1] %vm416_vm13, %v1439_v0  ;;  %v1451_v4 = vperm.slane %v1439_v0, 0  ;;  %v412_v5 = vrot.slane %v1439_v0, 4  ;;  %v409_v8 = vrot.slane %v1439_v0, 1  ;;  %v410_v10 = vrot.slane %v1439_v0, 2 }
 0x159   : > { %432 = vst.msk [vmem:[%s1437_s28 + $0x1] sm:$0x1] %vm416_vm13, %v1443_v2  ;;  %v1458_v6 = vperm.slane %v1443_v2, 0  ;;  %v427_v7 = vrot.slane %v1443_v2, 3  ;;  %v430_v9 = vrot.slane %v1443_v2, 6  ;;  %v413_v11 = vrot.slane %v1439_v0, 5 }
 0x15a   : > { %799 = vst.msk [vmem:[%s1437_s28 + $0x10] sm:$0x1] %vm416_vm13, %v1441_v1  ;;  %552 = vrot.lane.b32.xlu0 %v1451_v4, %s1359_s29  ;;  %448 = vrot.lane.b32.xlu1 %v1451_v4, %s1360_s30  ;;  %v411_v12 = vrot.slane %v1439_v0, 3  ;;  %v415_v13 = vrot.slane %v1439_v0, 7  ;;  %v414_v14 = vrot.slane %v1439_v0, 6  ;;  %v425_v15 = vrot.slane %v1443_v2, 1 }
 0x15b   : > { %814 = vst.msk [vmem:[%s1437_s28 + $0x11] sm:$0x1] %vm416_vm13, %v1445_v3  ;;  %480 = vrot.lane.b32.xlu2 %v1458_v6, %s1360_s30  ;;  %v426_v16 = vrot.slane %v1443_v2, 2  ;;  %v428_v17 = vrot.slane %v1443_v2, 4  ;;  %v429_v18 = vrot.slane %v1443_v2, 5  ;;  %v431_v19 = vrot.slane %v1443_v2, 7 }
 0x15c   : > { %421 = vst.msk [vmem:[%s1437_s28 + $0x80] sm:$0x1] %vm416_vm13, %v412_v5  ;;  %v792_v20 = vrot.slane %v1441_v1, 1  ;;  %v795_v21 = vrot.slane %v1441_v1, 4  ;;  %v798_v22 = vrot.slane %v1441_v1, 7  ;;  %v808_v23 = vrot.slane %v1445_v3, 2 }
 0x15d   : > { %435 = vst.msk [vmem:[%s1437_s28 + $0x61] sm:$0x1] %vm416_vm13, %v427_v7  ;;  %v794_v24 = vrot.slane %v1441_v1, 3  ;;  %v811_v25 = vrot.slane %v1445_v3, 5  ;;  %v793_v26 = vrot.slane %v1441_v1, 2  ;;  %v797_v27 = vrot.slane %v1441_v1, 6 }
 0x15e   : > { %418 = vst.msk [vmem:[%s1437_s28 + $0x20] sm:$0x1] %vm416_vm13, %v409_v8  ;;  %v796_v28 = vrot.slane %v1441_v1, 5  ;;  %v807_v29 = vrot.slane %v1445_v3, 1  ;;  %v810_v30 = vrot.slane %v1445_v3, 4  ;;  %v809_v31 = vrot.slane %v1445_v3, 3 }
 0x15f   : > { %438 = vst.msk [vmem:[%s1437_s28 + $0xc1] sm:$0x1] %vm416_vm13, %v430_v9  ;;  %v813_v32 = vrot.slane %v1445_v3, 7  ;;  %v812_v33 = vrot.slane %v1445_v3, 6  ;;  %v1631_v34 = vperm.slane %v412_v5, 0  ;;  %v1641_v35 = vperm.slane %v427_v7, 0 }
 0x160   : > { %419 = vst.msk [vmem:[%s1437_s28 + $0x40] sm:$0x1] %vm416_vm13, %v410_v10  ;;  %v1645_v36 = vperm.slane %v409_v8, 0  ;;  %v1648_v37 = vperm.slane %v1441_v1, 0  ;;  %v1658_v38 = vperm.slane %v430_v9, 0  ;;  %v1662_v39 = vperm.slane %v413_v11, 0 }
 0x161   : > { %422 = vst.msk [vmem:[%s1437_s28 + $0xa0] sm:$0x1] %vm416_vm13, %v413_v11  ;;  %v1666_v40 = vperm.slane %v410_v10, 0  ;;  %v1676_v41 = vperm.slane %v415_v13, 0  ;;  %v1680_v42 = vperm.slane %v411_v12, 0  ;;  %v1690_v43 = vperm.slane %v425_v15, 0 }
 0x162   : > { %624 = vrot.lane.b32.xlu0 %v1458_v6, %s1361_s3  ;;  %528 = vrot.lane.b32.xlu1 %v1458_v6, %s1362_s4  ;;  %420 = vst.msk [vmem:[%s1437_s28 + $0x60] sm:$0x1] %vm416_vm13, %v411_v12  ;;  %v1694_v44 = vperm.slane %v414_v14, 0  ;;  %v1704_v45 = vperm.slane %v428_v17, 0  ;;  %v1708_v46 = vperm.slane %v426_v16, 0  ;;  %v1718_v47 = vperm.slane %v431_v19, 0 }
 0x163   : > { %504 = vrot.lane.b32.xlu2 %v1451_v4, %s1362_s4  ;;  %424 = vst.msk [vmem:[%s1437_s28 + $0xe0] sm:$0x1] %vm416_vm13, %v415_v13  ;;  %v1722_v48 = vperm.slane %v429_v18, 0  ;;  %v2115_v1 = vperm.slane %v1445_v3, 0 }
 0x164   : > { %423 = vst.msk [vmem:[%s1437_s28 + $0xc0] sm:$0x1] %vm416_vm13, %v414_v14 }
 0x165   : > { %433 = vst.msk [vmem:[%s1437_s28 + $0x21] sm:$0x1] %vm416_vm13, %v425_v15 }
 0x166   : > { %434 = vst.msk [vmem:[%s1437_s28 + $0x41] sm:$0x1] %vm416_vm13, %v426_v16 }
 0x167   : > { %436 = vst.msk [vmem:[%s1437_s28 + $0x81] sm:$0x1] %vm416_vm13, %v428_v17 }
 0x168   : > { %437 = vst.msk [vmem:[%s1437_s28 + $0xa1] sm:$0x1] %vm416_vm13, %v429_v18 }
 0x169   : > { %439 = vst.msk [vmem:[%s1437_s28 + $0xe1] sm:$0x1] %vm416_vm13, %v431_v19 }
 0x16a   : > { %696 = vrot.lane.b32.xlu0 %v1451_v4, %s1363_s5  ;;  %600 = vrot.lane.b32.xlu1 %v1451_v4, %s1361_s3  ;;  %800 = vst.msk [vmem:[%s1437_s28 + $0x30] sm:$0x1] %vm416_vm13, %v792_v20 }
 0x16b   : > { %576 = vrot.lane.b32.xlu2 %v1458_v6, %s1359_s29  ;;  %803 = vst.msk [vmem:[%s1437_s28 + $0x90] sm:$0x1] %vm416_vm13, %v795_v21 }
 0x16c   : > { %806 = vst.msk [vmem:[%s1437_s28 + $0xf0] sm:$0x1] %vm416_vm13, %v798_v22 }
 0x16d   : > { %816 = vst.msk [vmem:[%s1437_s28 + $0x51] sm:$0x1] %vm416_vm13, %v808_v23 }
 0x16e   : > { %802 = vst.msk [vmem:[%s1437_s28 + $0x70] sm:$0x1] %vm416_vm13, %v794_v24 }
 0x16f   : > { %819 = vst.msk [vmem:[%s1437_s28 + $0xb1] sm:$0x1] %vm416_vm13, %v811_v25 }
 0x170   : > { %801 = vst.msk [vmem:[%s1437_s28 + $0x50] sm:$0x1] %vm416_vm13, %v793_v26 }
 0x171   : > { %805 = vst.msk [vmem:[%s1437_s28 + $0xd0] sm:$0x1] %vm416_vm13, %v797_v27 }
 0x172   : > { %768 = vrot.lane.b32.xlu0 %v1458_v6, %s1364_s6  ;;  %672 = vrot.lane.b32.xlu1 %v1458_v6, %s1365_s7  ;;  %804 = vst.msk [vmem:[%s1437_s28 + $0xb0] sm:$0x1] %vm416_vm13, %v796_v28 }
 0x173   : > { %648 = vrot.lane.b32.xlu2 %v1451_v4, %s1365_s7  ;;  %815 = vst.msk [vmem:[%s1437_s28 + $0x31] sm:$0x1] %vm416_vm13, %v807_v29 }
 0x174   : > { %818 = vst.msk [vmem:[%s1437_s28 + $0x91] sm:$0x1] %vm416_vm13, %v810_v30 }
 0x175   : > { %817 = vst.msk [vmem:[%s1437_s28 + $0x71] sm:$0x1] %vm416_vm13, %v809_v31 }
 0x176   : > { %821 = vst.msk [vmem:[%s1437_s28 + $0xf1] sm:$0x1] %vm416_vm13, %v813_v32 }
 0x177   : > { %820 = vst.msk [vmem:[%s1437_s28 + $0xd1] sm:$0x1] %vm416_vm13, %v812_v33 }
 0x17a   : > { %744 = vrot.lane.b32.xlu1 %v1451_v4, %s1364_s6  ;;  %456 = vrot.lane.b32.xlu0 %v1631_v34, %s1360_s30 }
 0x17b   : > { %720 = vrot.lane.b32.xlu2 %v1458_v6, %s1363_s5 }
 0x182   : > { %486 = vrot.lane.b32.xlu0 %v1641_v35, %s1360_s30  ;;  %450 = vrot.lane.b32.xlu1 %v1645_v36, %s1360_s30 }
 0x183   : > { %830 = vrot.lane.b32.xlu2 %v1648_v37, %s1360_s30 }
 0x18a   : > { %492 = vrot.lane.b32.xlu0 %v1658_v38, %s1360_s30  ;;  %458 = vrot.lane.b32.xlu1 %v1662_v39, %s1360_s30 }
 0x18b   : > { %452 = vrot.lane.b32.xlu2 %v1666_v40, %s1360_s30 }
 0x192   : > { %506 = vrot.lane.b32.xlu0 %v1645_v36, %s1362_s4  ;;  %462 = vrot.lane.b32.xlu1 %v1676_v41, %s1360_s30 }
 0x193   : > { %454 = vrot.lane.b32.xlu2 %v1680_v42, %s1360_s30 }
 0x19a   : > { %512 = vrot.lane.b32.xlu0 %v1631_v34, %s1362_s4  ;;  %482 = vrot.lane.b32.xlu1 %v1690_v43, %s1360_s30 }
 0x19b   : > { %460 = vrot.lane.b32.xlu2 %v1694_v44, %s1360_s30 }
 0x1a2   : > { %518 = vrot.lane.b32.xlu0 %v1676_v41, %s1362_s4  ;;  %488 = vrot.lane.b32.xlu1 %v1704_v45, %s1360_s30 }
 0x1a3   : > { %484 = vrot.lane.b32.xlu2 %v1708_v46, %s1360_s30 }
 0x1aa   : > { %532 = vrot.lane.b32.xlu0 %v1708_v46, %s1362_s4  ;;  %494 = vrot.lane.b32.xlu1 %v1718_v47, %s1360_s30 }
 0x1ab   : > { %490 = vrot.lane.b32.xlu2 %v1722_v48, %s1360_s30 }
 0x1b2   : > { %538 = vrot.lane.b32.xlu0 %v1722_v48, %s1362_s4  ;;  %508 = vrot.lane.b32.xlu1 %v1666_v40, %s1362_s4 }
 0x1b3   : > { %510 = vrot.lane.b32.xlu2 %v1680_v42, %s1362_s4 }
 0x1b5   : > { %v481_v49 = vpop.permute.xlu2 %480 }
 0x1b6   : > { %496 = vst.msk [vmem:[%s1437_s28 + $0x3] sm:$0x1] %vm416_vm13, %v481_v49 }
 0x1ba   : > { %558 = vrot.lane.b32.xlu0 %v1680_v42, %s1359_s29  ;;  %514 = vrot.lane.b32.xlu1 %v1662_v39, %s1362_s4 }
 0x1bb   : > { %516 = vrot.lane.b32.xlu2 %v1694_v44, %s1362_s4 }
 0x1bd   : > { %v505_v50 = vpop.permute.xlu2 %504 }
 0x1be   : > { %520 = vst.msk [vmem:[%s1437_s28 + $0x4] sm:$0x1] %vm416_vm13, %v505_v50 }
 0x1c2   : > { %564 = vrot.lane.b32.xlu0 %v1694_v44, %s1359_s29  ;;  %534 = vrot.lane.b32.xlu1 %v1641_v35, %s1362_s4 }
 0x1c3   : > { %530 = vrot.lane.b32.xlu2 %v1690_v43, %s1362_s4 }
 0x1c5   : > { %v577_v51 = vpop.permute.xlu2 %576 }
 0x1c6   : > { %592 = vst.msk [vmem:[%s1437_s28 + $0x7] sm:$0x1] %vm416_vm13, %v577_v51 }
 0x1ca   : > { %578 = vrot.lane.b32.xlu0 %v1690_v43, %s1359_s29  ;;  %540 = vrot.lane.b32.xlu1 %v1658_v38, %s1362_s4 }
 0x1cb   : > { %536 = vrot.lane.b32.xlu2 %v1704_v45, %s1362_s4 }
 0x1cc   : > { %v553_v52 = vpop.permute.xlu0 %552  ;;  %v449_v53 = vpop.permute.xlu1 %448 }
 0x1cd   : > { %568 = vst.msk [vmem:[%s1437_s28 + $0x6] sm:$0x1] %vm416_vm13, %v553_v52  ;;  %v649_v54 = vpop.permute.xlu2 %648 }
 0x1ce   : > { %664 = vst.msk [vmem:[%s1437_s28 + $0xa] sm:$0x1] %vm416_vm13, %v649_v54 }
 0x1cf   : > { %464 = vst.msk [vmem:[%s1437_s28 + $0x2] sm:$0x1] %vm416_vm13, %v449_v53 }
 0x1d2   : > { %584 = vrot.lane.b32.xlu0 %v1704_v45, %s1359_s29  ;;  %554 = vrot.lane.b32.xlu1 %v1645_v36, %s1359_s29 }
 0x1d3   : > { %542 = vrot.lane.b32.xlu2 %v1718_v47, %s1362_s4 }
 0x1d4   : > { %v625_v55 = vpop.permute.xlu0 %624  ;;  %v529_v56 = vpop.permute.xlu1 %528 }
 0x1d5   : > { %640 = vst.msk [vmem:[%s1437_s28 + $0x9] sm:$0x1] %vm416_vm13, %v625_v55  ;;  %v721_v57 = vpop.permute.xlu2 %720 }
 0x1d6   : > { %736 = vst.msk [vmem:[%s1437_s28 + $0xd] sm:$0x1] %vm416_vm13, %v721_v57 }
 0x1d7   : > { %544 = vst.msk [vmem:[%s1437_s28 + $0x5] sm:$0x1] %vm416_vm13, %v529_v56 }
 0x1da   : > { %590 = vrot.lane.b32.xlu0 %v1718_v47, %s1359_s29  ;;  %560 = vrot.lane.b32.xlu1 %v1631_v34, %s1359_s29 }
 0x1db   : > { %556 = vrot.lane.b32.xlu2 %v1666_v40, %s1359_s29 }
 0x1dc   : > { %v697_v58 = vpop.permute.xlu0 %696  ;;  %v601_v59 = vpop.permute.xlu1 %600 }
 0x1dd   : > { %712 = vst.msk [vmem:[%s1437_s28 + $0xc] sm:$0x1] %vm416_vm13, %v697_v58  ;;  %v831_v60 = vpop.permute.xlu2 %830 }
 0x1de   : > { %846 = vst.msk [vmem:[%s1437_s28 + $0x12] sm:$0x1] %vm416_vm13, %v831_v60 }
 0x1df   : > { %616 = vst.msk [vmem:[%s1437_s28 + $0x8] sm:$0x1] %vm416_vm13, %v601_v59 }
 0x1e2   : > { %604 = vrot.lane.b32.xlu0 %v1666_v40, %s1361_s3  ;;  %566 = vrot.lane.b32.xlu1 %v1676_v41, %s1359_s29 }
 0x1e3   : > { %562 = vrot.lane.b32.xlu2 %v1662_v39, %s1359_s29 }
 0x1e4   : > { %v769_v61 = vpop.permute.xlu0 %768  ;;  %v673_v62 = vpop.permute.xlu1 %672 }
 0x1e5   : > { %784 = vst.msk [vmem:[%s1437_s28 + $0xf] sm:$0x1] %vm416_vm13, %v769_v61  ;;  %v453_v63 = vpop.permute.xlu2 %452 }
 0x1e6   : > { %688 = vst.msk [vmem:[%s1437_s28 + $0xb] sm:$0x1] %vm416_vm13, %v673_v62 }
 0x1e7   : > { %466 = vst.msk [vmem:[%s1437_s28 + $0x42] sm:$0x1] %vm416_vm13, %v453_v63 }
 0x1ea   : > { %610 = vrot.lane.b32.xlu0 %v1662_v39, %s1361_s3  ;;  %580 = vrot.lane.b32.xlu1 %v1708_v46, %s1359_s29 }
 0x1eb   : > { %582 = vrot.lane.b32.xlu2 %v1641_v35, %s1359_s29 }
 0x1ec   : > { %v745_v0 = vpop.permute.xlu1 %744  ;;  %v457_v2 = vpop.permute.xlu0 %456 }
 0x1ed   : > { %760 = vst.msk [vmem:[%s1437_s28 + $0xe] sm:$0x1] %vm416_vm13, %v745_v0  ;;  %v455_v4 = vpop.permute.xlu2 %454 }
 0x1ee   : > { %468 = vst.msk [vmem:[%s1437_s28 + $0x82] sm:$0x1] %vm416_vm13, %v457_v2 }
 0x1ef   : > { %467 = vst.msk [vmem:[%s1437_s28 + $0x62] sm:$0x1] %vm416_vm13, %v455_v4 }
 0x1f2   : > { %630 = vrot.lane.b32.xlu0 %v1641_v35, %s1361_s3  ;;  %586 = vrot.lane.b32.xlu1 %v1722_v48, %s1359_s29 }
 0x1f3   : > { %588 = vrot.lane.b32.xlu2 %v1658_v38, %s1359_s29 }
 0x1f4   : > { %v487_v5 = vpop.permute.xlu0 %486  ;;  %v451_v6 = vpop.permute.xlu1 %450 }
 0x1f5   : > { %499 = vst.msk [vmem:[%s1437_s28 + $0x63] sm:$0x1] %vm416_vm13, %v487_v5  ;;  %v461_v7 = vpop.permute.xlu2 %460 }
 0x1f6   : > { %470 = vst.msk [vmem:[%s1437_s28 + $0xc2] sm:$0x1] %vm416_vm13, %v461_v7 }
 0x1f7   : > { %465 = vst.msk [vmem:[%s1437_s28 + $0x22] sm:$0x1] %vm416_vm13, %v451_v6 }
 0x1fa   : > { %636 = vrot.lane.b32.xlu0 %v1658_v38, %s1361_s3  ;;  %606 = vrot.lane.b32.xlu1 %v1680_v42, %s1361_s3 }
 0x1fb   : > { %602 = vrot.lane.b32.xlu2 %v1645_v36, %s1361_s3 }
 0x1fc   : > { %v493_v8 = vpop.permute.xlu0 %492  ;;  %v459_v9 = vpop.permute.xlu1 %458 }
 0x1fd   : > { %502 = vst.msk [vmem:[%s1437_s28 + $0xc3] sm:$0x1] %vm416_vm13, %v493_v8  ;;  %v485_v10 = vpop.permute.xlu2 %484 }
 0x1fe   : > { %498 = vst.msk [vmem:[%s1437_s28 + $0x43] sm:$0x1] %vm416_vm13, %v485_v10 }
 0x1ff   : > { %469 = vst.msk [vmem:[%s1437_s28 + $0xa2] sm:$0x1] %vm416_vm13, %v459_v9 }
 0x202   : > { %650 = vrot.lane.b32.xlu0 %v1645_v36, %s1365_s7  ;;  %612 = vrot.lane.b32.xlu1 %v1694_v44, %s1361_s3 }
 0x203   : > { %608 = vrot.lane.b32.xlu2 %v1631_v34, %s1361_s3 }
 0x204   : > { %v507_v11 = vpop.permute.xlu0 %506  ;;  %v463_v12 = vpop.permute.xlu1 %462 }
 0x205   : > { %v491_v13 = vpop.permute.xlu2 %490  ;;  %521 = vst.msk [vmem:[%s1437_s28 + $0x24] sm:$0x1] %vm416_vm13, %v507_v11 }
 0x206   : > { %501 = vst.msk [vmem:[%s1437_s28 + $0xa3] sm:$0x1] %vm416_vm13, %v491_v13 }
 0x207   : > { %471 = vst.msk [vmem:[%s1437_s28 + $0xe2] sm:$0x1] %vm416_vm13, %v463_v12 }
 0x20a   : > { %656 = vrot.lane.b32.xlu0 %v1631_v34, %s1365_s7  ;;  %626 = vrot.lane.b32.xlu1 %v1690_v43, %s1361_s3 }
 0x20b   : > { %614 = vrot.lane.b32.xlu2 %v1676_v41, %s1361_s3 }
 0x20c   : > { %v513_v14 = vpop.permute.xlu0 %512  ;;  %v483_v15 = vpop.permute.xlu1 %482 }
 0x20d   : > { %v511_v16 = vpop.permute.xlu2 %510  ;;  %524 = vst.msk [vmem:[%s1437_s28 + $0x84] sm:$0x1] %vm416_vm13, %v513_v14 }
 0x20e   : > { %523 = vst.msk [vmem:[%s1437_s28 + $0x64] sm:$0x1] %vm416_vm13, %v511_v16 }
 0x20f   : > { %497 = vst.msk [vmem:[%s1437_s28 + $0x23] sm:$0x1] %vm416_vm13, %v483_v15 }
 0x212   : > { %662 = vrot.lane.b32.xlu0 %v1676_v41, %s1365_s7  ;;  %632 = vrot.lane.b32.xlu1 %v1704_v45, %s1361_s3 }
 0x213   : > { %628 = vrot.lane.b32.xlu2 %v1708_v46, %s1361_s3 }
 0x214   : > { %v519_v17 = vpop.permute.xlu0 %518  ;;  %v489_v18 = vpop.permute.xlu1 %488 }
 0x215   : > { %v517_v19 = vpop.permute.xlu2 %516  ;;  %527 = vst.msk [vmem:[%s1437_s28 + $0xe4] sm:$0x1] %vm416_vm13, %v519_v17 }
 0x216   : > { %526 = vst.msk [vmem:[%s1437_s28 + $0xc4] sm:$0x1] %vm416_vm13, %v517_v19 }
 0x217   : > { %500 = vst.msk [vmem:[%s1437_s28 + $0x83] sm:$0x1] %vm416_vm13, %v489_v18 }
 0x21a   : > { %676 = vrot.lane.b32.xlu0 %v1708_v46, %s1365_s7  ;;  %638 = vrot.lane.b32.xlu1 %v1718_v47, %s1361_s3 }
 0x21b   : > { %634 = vrot.lane.b32.xlu2 %v1722_v48, %s1361_s3 }
 0x21c   : > { %v533_v49 = vpop.permute.xlu0 %532  ;;  %v495_v50 = vpop.permute.xlu1 %494 }
 0x21d   : > { %v531_v51 = vpop.permute.xlu2 %530  ;;  %546 = vst.msk [vmem:[%s1437_s28 + $0x45] sm:$0x1] %vm416_vm13, %v533_v49 }
 0x21e   : > { %545 = vst.msk [vmem:[%s1437_s28 + $0x25] sm:$0x1] %vm416_vm13, %v531_v51  ;;  %v2100_v51 = vperm.slane %v797_v27, 0  ;;  %v2119_v27 = vperm.slane %v807_v29, 0  ;;  %v2135_v29 = vperm.slane %v809_v31, 0 }
 0x21f   : > { %503 = vst.msk [vmem:[%s1437_s28 + $0xe3] sm:$0x1] %vm416_vm13, %v495_v50 }
 0x222   : > { %682 = vrot.lane.b32.xlu0 %v1722_v48, %s1365_s7  ;;  %652 = vrot.lane.b32.xlu1 %v1666_v40, %s1365_s7 }
 0x223   : > { %654 = vrot.lane.b32.xlu2 %v1680_v42, %s1365_s7 }
 0x224   : > { %v539_v52 = vpop.permute.xlu0 %538  ;;  %v509_v53 = vpop.permute.xlu1 %508 }
 0x225   : > { %v537_v54 = vpop.permute.xlu2 %536  ;;  %549 = vst.msk [vmem:[%s1437_s28 + $0xa5] sm:$0x1] %vm416_vm13, %v539_v52 }
 0x226   : > { %548 = vst.msk [vmem:[%s1437_s28 + $0x85] sm:$0x1] %vm416_vm13, %v537_v54 }
 0x227   : > { %522 = vst.msk [vmem:[%s1437_s28 + $0x44] sm:$0x1] %vm416_vm13, %v509_v53 }
 0x22a   : > { %702 = vrot.lane.b32.xlu0 %v1680_v42, %s1363_s5  ;;  %658 = vrot.lane.b32.xlu1 %v1662_v39, %s1365_s7 }
 0x22b   : > { %660 = vrot.lane.b32.xlu2 %v1694_v44, %s1365_s7 }
 0x22c   : > { %v559_v55 = vpop.permute.xlu0 %558  ;;  %v515_v56 = vpop.permute.xlu1 %514 }
 0x22d   : > { %v543_v57 = vpop.permute.xlu2 %542  ;;  %571 = vst.msk [vmem:[%s1437_s28 + $0x66] sm:$0x1] %vm416_vm13, %v559_v55 }
 0x22e   : > { %551 = vst.msk [vmem:[%s1437_s28 + $0xe5] sm:$0x1] %vm416_vm13, %v543_v57  ;;  %v2139_v57 = vperm.slane %v810_v30, 0  ;;  %v2155_v30 = vperm.slane %v812_v33, 0 }
 0x22f   : > { %525 = vst.msk [vmem:[%s1437_s28 + $0xa4] sm:$0x1] %vm416_vm13, %v515_v56 }
 0x232   : > { %708 = vrot.lane.b32.xlu0 %v1694_v44, %s1363_s5  ;;  %678 = vrot.lane.b32.xlu1 %v1641_v35, %s1365_s7 }
 0x233   : > { %674 = vrot.lane.b32.xlu2 %v1690_v43, %s1365_s7 }
 0x234   : > { %v565_v58 = vpop.permute.xlu0 %564  ;;  %v535_v59 = vpop.permute.xlu1 %534 }
 0x235   : > { %v557_v60 = vpop.permute.xlu2 %556  ;;  %574 = vst.msk [vmem:[%s1437_s28 + $0xc6] sm:$0x1] %vm416_vm13, %v565_v58 }
 0x236   : > { %570 = vst.msk [vmem:[%s1437_s28 + $0x46] sm:$0x1] %vm416_vm13, %v557_v60  ;;  %v2159_v60 = vperm.slane %v813_v32, 0 }
 0x237   : > { %547 = vst.msk [vmem:[%s1437_s28 + $0x65] sm:$0x1] %vm416_vm13, %v535_v59 }
 0x23a   : > { %722 = vrot.lane.b32.xlu0 %v1690_v43, %s1363_s5  ;;  %684 = vrot.lane.b32.xlu1 %v1658_v38, %s1365_s7 }
 0x23b   : > { %680 = vrot.lane.b32.xlu2 %v1704_v45, %s1365_s7 }
 0x23c   : > { %v579_v61 = vpop.permute.xlu0 %578  ;;  %v541_v62 = vpop.permute.xlu1 %540 }
 0x23d   : > { %v563_v63 = vpop.permute.xlu2 %562  ;;  %593 = vst.msk [vmem:[%s1437_s28 + $0x27] sm:$0x1] %vm416_vm13, %v579_v61 }
 0x23e   : > { %573 = vst.msk [vmem:[%s1437_s28 + $0xa6] sm:$0x1] %vm416_vm13, %v563_v63 }
 0x23f   : > { %550 = vst.msk [vmem:[%s1437_s28 + $0xc5] sm:$0x1] %vm416_vm13, %v541_v62 }
 0x242   : > { %728 = vrot.lane.b32.xlu0 %v1704_v45, %s1363_s5  ;;  %698 = vrot.lane.b32.xlu1 %v1645_v36, %s1363_s5 }
 0x243   : > { %686 = vrot.lane.b32.xlu2 %v1718_v47, %s1365_s7 }
 0x244   : > { %v585_v0 = vpop.permute.xlu0 %584  ;;  %v555_v2 = vpop.permute.xlu1 %554 }
 0x245   : > { %v583_v4 = vpop.permute.xlu2 %582  ;;  %596 = vst.msk [vmem:[%s1437_s28 + $0x87] sm:$0x1] %vm416_vm13, %v585_v0 }
 0x246   : > { %595 = vst.msk [vmem:[%s1437_s28 + $0x67] sm:$0x1] %vm416_vm13, %v583_v4 }
 0x247   : > { %569 = vst.msk [vmem:[%s1437_s28 + $0x26] sm:$0x1] %vm416_vm13, %v555_v2 }
 0x24a   : > { %734 = vrot.lane.b32.xlu0 %v1718_v47, %s1363_s5  ;;  %704 = vrot.lane.b32.xlu1 %v1631_v34, %s1363_s5 }
 0x24b   : > { %700 = vrot.lane.b32.xlu2 %v1666_v40, %s1363_s5 }
 0x24c   : > { %v591_v5 = vpop.permute.xlu0 %590  ;;  %v561_v6 = vpop.permute.xlu1 %560 }
 0x24d   : > { %v589_v7 = vpop.permute.xlu2 %588  ;;  %599 = vst.msk [vmem:[%s1437_s28 + $0xe7] sm:$0x1] %vm416_vm13, %v591_v5 }
 0x24e   : > { %598 = vst.msk [vmem:[%s1437_s28 + $0xc7] sm:$0x1] %vm416_vm13, %v589_v7 }
 0x24f   : > { %572 = vst.msk [vmem:[%s1437_s28 + $0x86] sm:$0x1] %vm416_vm13, %v561_v6 }
 0x252   : > { %748 = vrot.lane.b32.xlu0 %v1666_v40, %s1364_s6  ;;  %710 = vrot.lane.b32.xlu1 %v1676_v41, %s1363_s5 }
 0x253   : > { %706 = vrot.lane.b32.xlu2 %v1662_v39, %s1363_s5 }
 0x254   : > { %v605_v8 = vpop.permute.xlu0 %604  ;;  %v567_v9 = vpop.permute.xlu1 %566 }
 0x255   : > { %v603_v10 = vpop.permute.xlu2 %602  ;;  %618 = vst.msk [vmem:[%s1437_s28 + $0x48] sm:$0x1] %vm416_vm13, %v605_v8 }
 0x256   : > { %617 = vst.msk [vmem:[%s1437_s28 + $0x28] sm:$0x1] %vm416_vm13, %v603_v10 }
 0x257   : > { %575 = vst.msk [vmem:[%s1437_s28 + $0xe6] sm:$0x1] %vm416_vm13, %v567_v9 }
 0x25a   : > { %754 = vrot.lane.b32.xlu0 %v1662_v39, %s1364_s6  ;;  %724 = vrot.lane.b32.xlu1 %v1708_v46, %s1363_s5 }
 0x25b   : > { %726 = vrot.lane.b32.xlu2 %v1641_v35, %s1363_s5 }
 0x25c   : > { %v611_v40 = vpop.permute.xlu0 %610  ;;  %v581_v11 = vpop.permute.xlu1 %580 }
 0x25d   : > { %v609_v12 = vpop.permute.xlu2 %608  ;;  %621 = vst.msk [vmem:[%s1437_s28 + $0xa8] sm:$0x1] %vm416_vm13, %v611_v40 }
 0x25e   : > { %620 = vst.msk [vmem:[%s1437_s28 + $0x88] sm:$0x1] %vm416_vm13, %v609_v12 }
 0x25f   : > { %594 = vst.msk [vmem:[%s1437_s28 + $0x47] sm:$0x1] %vm416_vm13, %v581_v11 }
 0x262   : > { %774 = vrot.lane.b32.xlu0 %v1641_v35, %s1364_s6  ;;  %730 = vrot.lane.b32.xlu1 %v1722_v48, %s1363_s5 }
 0x263   : > { %732 = vrot.lane.b32.xlu2 %v1658_v38, %s1363_s5 }
 0x264   : > { %v631_v39 = vpop.permute.xlu0 %630  ;;  %v587_v13 = vpop.permute.xlu1 %586 }
 0x265   : > { %v615_v14 = vpop.permute.xlu2 %614  ;;  %643 = vst.msk [vmem:[%s1437_s28 + $0x69] sm:$0x1] %vm416_vm13, %v631_v39 }
 0x266   : > { %623 = vst.msk [vmem:[%s1437_s28 + $0xe8] sm:$0x1] %vm416_vm13, %v615_v14 }
 0x267   : > { %597 = vst.msk [vmem:[%s1437_s28 + $0xa7] sm:$0x1] %vm416_vm13, %v587_v13 }
 0x26a   : > { %780 = vrot.lane.b32.xlu0 %v1658_v38, %s1364_s6  ;;  %750 = vrot.lane.b32.xlu1 %v1680_v42, %s1364_s6  ;;  %v2008_v38 = vperm.slane %v792_v20, 0  ;;  %v2024_v20 = vperm.slane %v795_v21, 0  ;;  %v2040_v21 = vperm.slane %v798_v22, 0  ;;  %v2056_v22 = vperm.slane %v808_v23, 0 }
 0x26b   : > { %746 = vrot.lane.b32.xlu2 %v1645_v36, %s1364_s6  ;;  %v2072_v23 = vperm.slane %v811_v25, 0 }
 0x26c   : > { %v637_v35 = vpop.permute.xlu0 %636  ;;  %v607_v15 = vpop.permute.xlu1 %606 }
 0x26d   : > { %v629_v16 = vpop.permute.xlu2 %628  ;;  %646 = vst.msk [vmem:[%s1437_s28 + $0xc9] sm:$0x1] %vm416_vm13, %v637_v35 }
 0x26e   : > { %642 = vst.msk [vmem:[%s1437_s28 + $0x49] sm:$0x1] %vm416_vm13, %v629_v16 }
 0x26f   : > { %619 = vst.msk [vmem:[%s1437_s28 + $0x68] sm:$0x1] %vm416_vm13, %v607_v15 }
 0x272   : > { %832 = vrot.lane.b32.xlu0 %v2008_v38, %s1360_s30  ;;  %756 = vrot.lane.b32.xlu1 %v1694_v44, %s1364_s6 }
 0x273   : > { %752 = vrot.lane.b32.xlu2 %v1631_v34, %s1364_s6 }
 0x274   : > { %v651_v36 = vpop.permute.xlu0 %650  ;;  %v613_v42 = vpop.permute.xlu1 %612 }
 0x275   : > { %v635_v17 = vpop.permute.xlu2 %634  ;;  %665 = vst.msk [vmem:[%s1437_s28 + $0x2a] sm:$0x1] %vm416_vm13, %v651_v36 }
 0x276   : > { %645 = vst.msk [vmem:[%s1437_s28 + $0xa9] sm:$0x1] %vm416_vm13, %v635_v17 }
 0x277   : > { %622 = vst.msk [vmem:[%s1437_s28 + $0xc8] sm:$0x1] %vm416_vm13, %v613_v42 }
 0x27a   : > { %838 = vrot.lane.b32.xlu0 %v2024_v20, %s1360_s30  ;;  %770 = vrot.lane.b32.xlu1 %v1690_v43, %s1364_s6 }
 0x27b   : > { %758 = vrot.lane.b32.xlu2 %v1676_v41, %s1364_s6 }
 0x27c   : > { %v657_v34 = vpop.permute.xlu0 %656  ;;  %v627_v44 = vpop.permute.xlu1 %626 }
 0x27d   : > { %v655_v18 = vpop.permute.xlu2 %654  ;;  %668 = vst.msk [vmem:[%s1437_s28 + $0x8a] sm:$0x1] %vm416_vm13, %v657_v34 }
 0x27e   : > { %667 = vst.msk [vmem:[%s1437_s28 + $0x6a] sm:$0x1] %vm416_vm13, %v655_v18 }
 0x27f   : > { %641 = vst.msk [vmem:[%s1437_s28 + $0x29] sm:$0x1] %vm416_vm13, %v627_v44 }
 0x282   : > { %844 = vrot.lane.b32.xlu0 %v2040_v21, %s1360_s30  ;;  %776 = vrot.lane.b32.xlu1 %v1704_v45, %s1364_s6 }
 0x283   : > { %772 = vrot.lane.b32.xlu2 %v1708_v46, %s1364_s6 }
 0x284   : > { %v663_v41 = vpop.permute.xlu0 %662  ;;  %v633_v43 = vpop.permute.xlu1 %632 }
 0x285   : > { %v661_v19 = vpop.permute.xlu2 %660  ;;  %671 = vst.msk [vmem:[%s1437_s28 + $0xea] sm:$0x1] %vm416_vm13, %v663_v41 }
 0x286   : > { %670 = vst.msk [vmem:[%s1437_s28 + $0xca] sm:$0x1] %vm416_vm13, %v661_v19 }
 0x287   : > { %644 = vst.msk [vmem:[%s1437_s28 + $0x89] sm:$0x1] %vm416_vm13, %v633_v43 }
 0x28a   : > { %866 = vrot.lane.b32.xlu0 %v2056_v22, %s1360_s30  ;;  %782 = vrot.lane.b32.xlu1 %v1718_v47, %s1364_s6  ;;  %v2076_v47 = vperm.slane %v793_v26, 0 }
 0x28b   : > { %778 = vrot.lane.b32.xlu2 %v1722_v48, %s1364_s6  ;;  %v2080_v48 = vperm.slane %v794_v24, 0  ;;  %v2096_v24 = vperm.slane %v796_v28, 0 }
 0x28c   : > { %v677_v45 = vpop.permute.xlu0 %676  ;;  %v639_v46 = vpop.permute.xlu1 %638 }
 0x28d   : > { %v675_v49 = vpop.permute.xlu2 %674  ;;  %690 = vst.msk [vmem:[%s1437_s28 + $0x4b] sm:$0x1] %vm416_vm13, %v677_v45 }
 0x28e   : > { %689 = vst.msk [vmem:[%s1437_s28 + $0x2b] sm:$0x1] %vm416_vm13, %v675_v49 }
 0x28f   : > { %647 = vst.msk [vmem:[%s1437_s28 + $0xe9] sm:$0x1] %vm416_vm13, %v639_v46 }
 0x292   : > { %872 = vrot.lane.b32.xlu0 %v2072_v23, %s1360_s30  ;;  %834 = vrot.lane.b32.xlu1 %v2076_v47, %s1360_s30 }
 0x293   : > { %836 = vrot.lane.b32.xlu2 %v2080_v48, %s1360_s30 }
 0x294   : > { %v683_v25 = vpop.permute.xlu0 %682  ;;  %v653_v50 = vpop.permute.xlu1 %652 }
 0x295   : > { %v681_v26 = vpop.permute.xlu2 %680  ;;  %693 = vst.msk [vmem:[%s1437_s28 + $0xab] sm:$0x1] %vm416_vm13, %v683_v25 }
 0x296   : > { %692 = vst.msk [vmem:[%s1437_s28 + $0x8b] sm:$0x1] %vm416_vm13, %v681_v26 }
 0x297   : > { %666 = vst.msk [vmem:[%s1437_s28 + $0x4a] sm:$0x1] %vm416_vm13, %v653_v50 }
 0x29a   : > { %886 = vrot.lane.b32.xlu0 %v1648_v37, %s1362_s4  ;;  %840 = vrot.lane.b32.xlu1 %v2096_v24, %s1360_s30 }
 0x29b   : > { %842 = vrot.lane.b32.xlu2 %v2100_v51, %s1360_s30 }
 0x29c   : > { %v703_v52 = vpop.permute.xlu0 %702  ;;  %v659_v53 = vpop.permute.xlu1 %658 }
 0x29d   : > { %v687_v28 = vpop.permute.xlu2 %686  ;;  %715 = vst.msk [vmem:[%s1437_s28 + $0x6c] sm:$0x1] %vm416_vm13, %v703_v52 }
 0x29e   : > { %695 = vst.msk [vmem:[%s1437_s28 + $0xeb] sm:$0x1] %vm416_vm13, %v687_v28 }
 0x29f   : > { %669 = vst.msk [vmem:[%s1437_s28 + $0xaa] sm:$0x1] %vm416_vm13, %v659_v53 }
 0x2a2   : > { %892 = vrot.lane.b32.xlu0 %v2080_v48, %s1362_s4  ;;  %862 = vrot.lane.b32.xlu1 %v2115_v1, %s1360_s30 }
 0x2a3   : > { %864 = vrot.lane.b32.xlu2 %v2119_v27, %s1360_s30 }
 0x2a4   : > { %v709_v54 = vpop.permute.xlu0 %708  ;;  %v679_v55 = vpop.permute.xlu1 %678 }
 0x2a5   : > { %v701_v56 = vpop.permute.xlu2 %700  ;;  %718 = vst.msk [vmem:[%s1437_s28 + $0xcc] sm:$0x1] %vm416_vm13, %v709_v54 }
 0x2a6   : > { %714 = vst.msk [vmem:[%s1437_s28 + $0x4c] sm:$0x1] %vm416_vm13, %v701_v56 }
 0x2a7   : > { %691 = vst.msk [vmem:[%s1437_s28 + $0x6b] sm:$0x1] %vm416_vm13, %v679_v55 }
 0x2aa   : > { %898 = vrot.lane.b32.xlu0 %v2100_v51, %s1362_s4  ;;  %868 = vrot.lane.b32.xlu1 %v2135_v29, %s1360_s30 }
 0x2ab   : > { %870 = vrot.lane.b32.xlu2 %v2139_v57, %s1360_s30 }
 0x2ac   : > { %v723_v58 = vpop.permute.xlu0 %722  ;;  %v685_v59 = vpop.permute.xlu1 %684 }
 0x2ad   : > { %v707_v31 = vpop.permute.xlu2 %706  ;;  %737 = vst.msk [vmem:[%s1437_s28 + $0x2d] sm:$0x1] %vm416_vm13, %v723_v58 }
 0x2ae   : > { %717 = vst.msk [vmem:[%s1437_s28 + $0xac] sm:$0x1] %vm416_vm13, %v707_v31 }
 0x2af   : > { %694 = vst.msk [vmem:[%s1437_s28 + $0xcb] sm:$0x1] %vm416_vm13, %v685_v59 }
 0x2b2   : > { %912 = vrot.lane.b32.xlu0 %v2119_v27, %s1362_s4  ;;  %874 = vrot.lane.b32.xlu1 %v2155_v30, %s1360_s30 }
 0x2b3   : > { %876 = vrot.lane.b32.xlu2 %v2159_v60, %s1360_s30 }
 0x2b4   : > { %v729_v61 = vpop.permute.xlu0 %728  ;;  %v699_v62 = vpop.permute.xlu1 %698 }
 0x2b5   : > { %v727_v33 = vpop.permute.xlu2 %726  ;;  %740 = vst.msk [vmem:[%s1437_s28 + $0x8d] sm:$0x1] %vm416_vm13, %v729_v61 }
 0x2b6   : > { %739 = vst.msk [vmem:[%s1437_s28 + $0x6d] sm:$0x1] %vm416_vm13, %v727_v33 }
 0x2b7   : > { %713 = vst.msk [vmem:[%s1437_s28 + $0x2c] sm:$0x1] %vm416_vm13, %v699_v62 }
 0x2ba   : > { %918 = vrot.lane.b32.xlu0 %v2139_v57, %s1362_s4  ;;  %888 = vrot.lane.b32.xlu1 %v2008_v38, %s1362_s4 }
 0x2bb   : > { %890 = vrot.lane.b32.xlu2 %v2076_v47, %s1362_s4 }
 0x2bc   : > { %v735_v3 = vpop.permute.xlu0 %734  ;;  %v705_v32 = vpop.permute.xlu1 %704 }
 0x2bd   : > { %v733_v63 = vpop.permute.xlu2 %732  ;;  %743 = vst.msk [vmem:[%s1437_s28 + $0xed] sm:$0x1] %vm416_vm13, %v735_v3 }
 0x2be   : > { %742 = vst.msk [vmem:[%s1437_s28 + $0xcd] sm:$0x1] %vm416_vm13, %v733_v63 }
 0x2bf   : > { %716 = vst.msk [vmem:[%s1437_s28 + $0x8c] sm:$0x1] %vm416_vm13, %v705_v32 }
 0x2c2   : > { %924 = vrot.lane.b32.xlu0 %v2159_v60, %s1362_s4  ;;  %894 = vrot.lane.b32.xlu1 %v2024_v20, %s1362_s4 }
 0x2c3   : > { %896 = vrot.lane.b32.xlu2 %v2096_v24, %s1362_s4 }
 0x2c4   : > { %v749_v0 = vpop.permute.xlu0 %748  ;;  %v711_v2 = vpop.permute.xlu1 %710 }
 0x2c5   : > { %v747_v4 = vpop.permute.xlu2 %746  ;;  %762 = vst.msk [vmem:[%s1437_s28 + $0x4e] sm:$0x1] %vm416_vm13, %v749_v0 }
 0x2c6   : > { %761 = vst.msk [vmem:[%s1437_s28 + $0x2e] sm:$0x1] %vm416_vm13, %v747_v4 }
 0x2c7   : > { %719 = vst.msk [vmem:[%s1437_s28 + $0xec] sm:$0x1] %vm416_vm13, %v711_v2 }
 0x2ca   : > { %938 = vrot.lane.b32.xlu0 %v2076_v47, %s1359_s29  ;;  %900 = vrot.lane.b32.xlu1 %v2040_v21, %s1362_s4 }
 0x2cb   : > { %910 = vrot.lane.b32.xlu2 %v2115_v1, %s1362_s4 }
 0x2cc   : > { %v755_v5 = vpop.permute.xlu0 %754  ;;  %v725_v6 = vpop.permute.xlu1 %724 }
 0x2cd   : > { %v753_v7 = vpop.permute.xlu2 %752  ;;  %765 = vst.msk [vmem:[%s1437_s28 + $0xae] sm:$0x1] %vm416_vm13, %v755_v5 }
 0x2ce   : > { %764 = vst.msk [vmem:[%s1437_s28 + $0x8e] sm:$0x1] %vm416_vm13, %v753_v7 }
 0x2cf   : > { %738 = vst.msk [vmem:[%s1437_s28 + $0x4d] sm:$0x1] %vm416_vm13, %v725_v6 }
 0x2d2   : > { %944 = vrot.lane.b32.xlu0 %v2096_v24, %s1359_s29  ;;  %914 = vrot.lane.b32.xlu1 %v2056_v22, %s1362_s4 }
 0x2d3   : > { %916 = vrot.lane.b32.xlu2 %v2135_v29, %s1362_s4 }
 0x2d4   : > { %v775_v8 = vpop.permute.xlu0 %774  ;;  %v731_v9 = vpop.permute.xlu1 %730 }
 0x2d5   : > { %v759_v10 = vpop.permute.xlu2 %758  ;;  %787 = vst.msk [vmem:[%s1437_s28 + $0x6f] sm:$0x1] %vm416_vm13, %v775_v8 }
 0x2d6   : > { %767 = vst.msk [vmem:[%s1437_s28 + $0xee] sm:$0x1] %vm416_vm13, %v759_v10 }
 0x2d7   : > { %741 = vst.msk [vmem:[%s1437_s28 + $0xad] sm:$0x1] %vm416_vm13, %v731_v9 }
 0x2da   : > { %958 = vrot.lane.b32.xlu0 %v2115_v1, %s1359_s29  ;;  %920 = vrot.lane.b32.xlu1 %v2072_v23, %s1362_s4 }
 0x2db   : > { %922 = vrot.lane.b32.xlu2 %v2155_v30, %s1362_s4 }
 0x2dc   : > { %v781_v40 = vpop.permute.xlu0 %780  ;;  %v751_v11 = vpop.permute.xlu1 %750 }
 0x2dd   : > { %v773_v12 = vpop.permute.xlu2 %772  ;;  %790 = vst.msk [vmem:[%s1437_s28 + $0xcf] sm:$0x1] %vm416_vm13, %v781_v40 }
 0x2de   : > { %786 = vst.msk [vmem:[%s1437_s28 + $0x4f] sm:$0x1] %vm416_vm13, %v773_v12 }
 0x2df   : > { %763 = vst.msk [vmem:[%s1437_s28 + $0x6e] sm:$0x1] %vm416_vm13, %v751_v11 }
 0x2e2   : > { %964 = vrot.lane.b32.xlu0 %v2135_v29, %s1359_s29  ;;  %934 = vrot.lane.b32.xlu1 %v1648_v37, %s1359_s29 }
 0x2e3   : > { %936 = vrot.lane.b32.xlu2 %v2008_v38, %s1359_s29 }
 0x2e4   : > { %v833_v39 = vpop.permute.xlu0 %832  ;;  %v757_v13 = vpop.permute.xlu1 %756 }
 0x2e5   : > { %v779_v14 = vpop.permute.xlu2 %778  ;;  %847 = vst.msk [vmem:[%s1437_s28 + $0x32] sm:$0x1] %vm416_vm13, %v833_v39 }
 0x2e6   : > { %789 = vst.msk [vmem:[%s1437_s28 + $0xaf] sm:$0x1] %vm416_vm13, %v779_v14 }
 0x2e7   : > { %766 = vst.msk [vmem:[%s1437_s28 + $0xce] sm:$0x1] %vm416_vm13, %v757_v13 }
 0x2ea   : > { %970 = vrot.lane.b32.xlu0 %v2155_v30, %s1359_s29  ;;  %940 = vrot.lane.b32.xlu1 %v2080_v48, %s1359_s29 }
 0x2eb   : > { %942 = vrot.lane.b32.xlu2 %v2024_v20, %s1359_s29 }
 0x2ec   : > { %v839_v35 = vpop.permute.xlu0 %838  ;;  %v771_v15 = vpop.permute.xlu1 %770 }
 0x2ed   : > { %v837_v16 = vpop.permute.xlu2 %836  ;;  %850 = vst.msk [vmem:[%s1437_s28 + $0x92] sm:$0x1] %vm416_vm13, %v839_v35 }
 0x2ee   : > { %849 = vst.msk [vmem:[%s1437_s28 + $0x72] sm:$0x1] %vm416_vm13, %v837_v16 }
 0x2ef   : > { %785 = vst.msk [vmem:[%s1437_s28 + $0x2f] sm:$0x1] %vm416_vm13, %v771_v15 }
 0x2f2   : > { %984 = vrot.lane.b32.xlu0 %v2008_v38, %s1361_s3  ;;  %946 = vrot.lane.b32.xlu1 %v2100_v51, %s1359_s29 }
 0x2f3   : > { %948 = vrot.lane.b32.xlu2 %v2040_v21, %s1359_s29 }
 0x2f4   : > { %v845_v36 = vpop.permute.xlu0 %844  ;;  %v777_v42 = vpop.permute.xlu1 %776 }
 0x2f5   : > { %v843_v17 = vpop.permute.xlu2 %842  ;;  %853 = vst.msk [vmem:[%s1437_s28 + $0xf2] sm:$0x1] %vm416_vm13, %v845_v36 }
 0x2f6   : > { %852 = vst.msk [vmem:[%s1437_s28 + $0xd2] sm:$0x1] %vm416_vm13, %v843_v17 }
 0x2f7   : > { %788 = vst.msk [vmem:[%s1437_s28 + $0x8f] sm:$0x1] %vm416_vm13, %v777_v42 }
 0x2fa   : > { %990 = vrot.lane.b32.xlu0 %v2024_v20, %s1361_s3  ;;  %960 = vrot.lane.b32.xlu1 %v2119_v27, %s1359_s29 }
 0x2fb   : > { %962 = vrot.lane.b32.xlu2 %v2056_v22, %s1359_s29 }
 0x2fc   : > { %v867_v34 = vpop.permute.xlu0 %866  ;;  %v783_v44 = vpop.permute.xlu1 %782 }
 0x2fd   : > { %v865_v18 = vpop.permute.xlu2 %864  ;;  %880 = vst.msk [vmem:[%s1437_s28 + $0x53] sm:$0x1] %vm416_vm13, %v867_v34 }
 0x2fe   : > { %879 = vst.msk [vmem:[%s1437_s28 + $0x33] sm:$0x1] %vm416_vm13, %v865_v18 }
 0x2ff   : > { %791 = vst.msk [vmem:[%s1437_s28 + $0xef] sm:$0x1] %vm416_vm13, %v783_v44 }
 0x302   : > { %996 = vrot.lane.b32.xlu0 %v2040_v21, %s1361_s3  ;;  %966 = vrot.lane.b32.xlu1 %v2139_v57, %s1359_s29 }
 0x303   : > { %968 = vrot.lane.b32.xlu2 %v2072_v23, %s1359_s29 }
 0x304   : > { %v873_v41 = vpop.permute.xlu0 %872  ;;  %v835_v43 = vpop.permute.xlu1 %834 }
 0x305   : > { %v871_v19 = vpop.permute.xlu2 %870  ;;  %883 = vst.msk [vmem:[%s1437_s28 + $0xb3] sm:$0x1] %vm416_vm13, %v873_v41 }
 0x306   : > { %882 = vst.msk [vmem:[%s1437_s28 + $0x93] sm:$0x1] %vm416_vm13, %v871_v19 }
 0x307   : > { %848 = vst.msk [vmem:[%s1437_s28 + $0x52] sm:$0x1] %vm416_vm13, %v835_v43 }
 0x30a   : > { %1010 = vrot.lane.b32.xlu0 %v2056_v22, %s1361_s3  ;;  %972 = vrot.lane.b32.xlu1 %v2159_v60, %s1359_s29 }
 0x30b   : > { %982 = vrot.lane.b32.xlu2 %v1648_v37, %s1361_s3 }
 0x30c   : > { %v887_v45 = vpop.permute.xlu0 %886  ;;  %v841_v46 = vpop.permute.xlu1 %840 }
 0x30d   : > { %v877_v49 = vpop.permute.xlu2 %876  ;;  %902 = vst.msk [vmem:[%s1437_s28 + $0x14] sm:$0x1] %vm416_vm13, %v887_v45 }
 0x30e   : > { %885 = vst.msk [vmem:[%s1437_s28 + $0xf3] sm:$0x1] %vm416_vm13, %v877_v49 }
 0x30f   : > { %851 = vst.msk [vmem:[%s1437_s28 + $0xb2] sm:$0x1] %vm416_vm13, %v841_v46 }
 0x312   : > { %1016 = vrot.lane.b32.xlu0 %v2072_v23, %s1361_s3  ;;  %986 = vrot.lane.b32.xlu1 %v2076_v47, %s1361_s3 }
 0x313   : > { %988 = vrot.lane.b32.xlu2 %v2080_v48, %s1361_s3 }
 0x314   : > { %v893_v25 = vpop.permute.xlu0 %892  ;;  %v863_v50 = vpop.permute.xlu1 %862 }
 0x315   : > { %v891_v26 = vpop.permute.xlu2 %890  ;;  %905 = vst.msk [vmem:[%s1437_s28 + $0x74] sm:$0x1] %vm416_vm13, %v893_v25 }
 0x316   : > { %904 = vst.msk [vmem:[%s1437_s28 + $0x54] sm:$0x1] %vm416_vm13, %v891_v26 }
 0x317   : > { %878 = vst.msk [vmem:[%s1437_s28 + $0x13] sm:$0x1] %vm416_vm13, %v863_v50 }
 0x31a   : > { %1030 = vrot.lane.b32.xlu0 %v1648_v37, %s1365_s7  ;;  %992 = vrot.lane.b32.xlu1 %v2096_v24, %s1361_s3 }
 0x31b   : > { %994 = vrot.lane.b32.xlu2 %v2100_v51, %s1361_s3 }
 0x31c   : > { %v899_v52 = vpop.permute.xlu0 %898  ;;  %v869_v53 = vpop.permute.xlu1 %868 }
 0x31d   : > { %v897_v28 = vpop.permute.xlu2 %896  ;;  %908 = vst.msk [vmem:[%s1437_s28 + $0xd4] sm:$0x1] %vm416_vm13, %v899_v52 }
 0x31e   : > { %907 = vst.msk [vmem:[%s1437_s28 + $0xb4] sm:$0x1] %vm416_vm13, %v897_v28 }
 0x31f   : > { %881 = vst.msk [vmem:[%s1437_s28 + $0x73] sm:$0x1] %vm416_vm13, %v869_v53 }
 0x322   : > { %1036 = vrot.lane.b32.xlu0 %v2080_v48, %s1365_s7  ;;  %1006 = vrot.lane.b32.xlu1 %v2115_v1, %s1361_s3 }
 0x323   : > { %1008 = vrot.lane.b32.xlu2 %v2119_v27, %s1361_s3 }
 0x324   : > { %v913_v54 = vpop.permute.xlu0 %912  ;;  %v875_v55 = vpop.permute.xlu1 %874 }
 0x325   : > { %v911_v56 = vpop.permute.xlu2 %910  ;;  %927 = vst.msk [vmem:[%s1437_s28 + $0x35] sm:$0x1] %vm416_vm13, %v913_v54 }
 0x326   : > { %926 = vst.msk [vmem:[%s1437_s28 + $0x15] sm:$0x1] %vm416_vm13, %v911_v56 }
 0x327   : > { %884 = vst.msk [vmem:[%s1437_s28 + $0xd3] sm:$0x1] %vm416_vm13, %v875_v55 }
 0x32a   : > { %1042 = vrot.lane.b32.xlu0 %v2100_v51, %s1365_s7  ;;  %1012 = vrot.lane.b32.xlu1 %v2135_v29, %s1361_s3 }
 0x32b   : > { %1014 = vrot.lane.b32.xlu2 %v2139_v57, %s1361_s3 }
 0x32c   : > { %v919_v58 = vpop.permute.xlu0 %918  ;;  %v889_v59 = vpop.permute.xlu1 %888 }
 0x32d   : > { %v917_v31 = vpop.permute.xlu2 %916  ;;  %930 = vst.msk [vmem:[%s1437_s28 + $0x95] sm:$0x1] %vm416_vm13, %v919_v58 }
 0x32e   : > { %929 = vst.msk [vmem:[%s1437_s28 + $0x75] sm:$0x1] %vm416_vm13, %v917_v31 }
 0x32f   : > { %903 = vst.msk [vmem:[%s1437_s28 + $0x34] sm:$0x1] %vm416_vm13, %v889_v59 }
 0x332   : > { %1056 = vrot.lane.b32.xlu0 %v2119_v27, %s1365_s7  ;;  %1018 = vrot.lane.b32.xlu1 %v2155_v30, %s1361_s3 }
 0x333   : > { %1020 = vrot.lane.b32.xlu2 %v2159_v60, %s1361_s3 }
 0x334   : > { %v925_v61 = vpop.permute.xlu0 %924  ;;  %v895_v62 = vpop.permute.xlu1 %894 }
 0x335   : > { %v923_v33 = vpop.permute.xlu2 %922  ;;  %933 = vst.msk [vmem:[%s1437_s28 + $0xf5] sm:$0x1] %vm416_vm13, %v925_v61 }
 0x336   : > { %932 = vst.msk [vmem:[%s1437_s28 + $0xd5] sm:$0x1] %vm416_vm13, %v923_v33 }
 0x337   : > { %906 = vst.msk [vmem:[%s1437_s28 + $0x94] sm:$0x1] %vm416_vm13, %v895_v62 }
 0x33a   : > { %1062 = vrot.lane.b32.xlu0 %v2139_v57, %s1365_s7  ;;  %1032 = vrot.lane.b32.xlu1 %v2008_v38, %s1365_s7 }
 0x33b   : > { %1034 = vrot.lane.b32.xlu2 %v2076_v47, %s1365_s7 }
 0x33c   : > { %v939_v3 = vpop.permute.xlu0 %938  ;;  %v901_v32 = vpop.permute.xlu1 %900 }
 0x33d   : > { %v937_v63 = vpop.permute.xlu2 %936  ;;  %952 = vst.msk [vmem:[%s1437_s28 + $0x56] sm:$0x1] %vm416_vm13, %v939_v3 }
 0x33e   : > { %951 = vst.msk [vmem:[%s1437_s28 + $0x36] sm:$0x1] %vm416_vm13, %v937_v63 }
 0x33f   : > { %909 = vst.msk [vmem:[%s1437_s28 + $0xf4] sm:$0x1] %vm416_vm13, %v901_v32 }
 0x342   : > { %1068 = vrot.lane.b32.xlu0 %v2159_v60, %s1365_s7  ;;  %1038 = vrot.lane.b32.xlu1 %v2024_v20, %s1365_s7 }
 0x343   : > { %1040 = vrot.lane.b32.xlu2 %v2096_v24, %s1365_s7 }
 0x344   : > { %v945_v0 = vpop.permute.xlu0 %944  ;;  %v915_v2 = vpop.permute.xlu1 %914 }
 0x345   : > { %v943_v4 = vpop.permute.xlu2 %942  ;;  %955 = vst.msk [vmem:[%s1437_s28 + $0xb6] sm:$0x1] %vm416_vm13, %v945_v0 }
 0x346   : > { %954 = vst.msk [vmem:[%s1437_s28 + $0x96] sm:$0x1] %vm416_vm13, %v943_v4 }
 0x347   : > { %928 = vst.msk [vmem:[%s1437_s28 + $0x55] sm:$0x1] %vm416_vm13, %v915_v2 }
 0x34a   : > { %1082 = vrot.lane.b32.xlu0 %v2076_v47, %s1363_s5  ;;  %1044 = vrot.lane.b32.xlu1 %v2040_v21, %s1365_s7 }
 0x34b   : > { %1054 = vrot.lane.b32.xlu2 %v2115_v1, %s1365_s7 }
 0x34c   : > { %v959_v5 = vpop.permute.xlu0 %958  ;;  %v921_v6 = vpop.permute.xlu1 %920 }
 0x34d   : > { %v949_v7 = vpop.permute.xlu2 %948  ;;  %974 = vst.msk [vmem:[%s1437_s28 + $0x17] sm:$0x1] %vm416_vm13, %v959_v5 }
 0x34e   : > { %957 = vst.msk [vmem:[%s1437_s28 + $0xf6] sm:$0x1] %vm416_vm13, %v949_v7 }
 0x34f   : > { %931 = vst.msk [vmem:[%s1437_s28 + $0xb5] sm:$0x1] %vm416_vm13, %v921_v6 }
 0x352   : > { %1088 = vrot.lane.b32.xlu0 %v2096_v24, %s1363_s5  ;;  %1058 = vrot.lane.b32.xlu1 %v2056_v22, %s1365_s7 }
 0x353   : > { %1060 = vrot.lane.b32.xlu2 %v2135_v29, %s1365_s7 }
 0x354   : > { %v965_v8 = vpop.permute.xlu0 %964  ;;  %v935_v9 = vpop.permute.xlu1 %934 }
 0x355   : > { %v963_v10 = vpop.permute.xlu2 %962  ;;  %977 = vst.msk [vmem:[%s1437_s28 + $0x77] sm:$0x1] %vm416_vm13, %v965_v8 }
 0x356   : > { %976 = vst.msk [vmem:[%s1437_s28 + $0x57] sm:$0x1] %vm416_vm13, %v963_v10 }
 0x357   : > { %950 = vst.msk [vmem:[%s1437_s28 + $0x16] sm:$0x1] %vm416_vm13, %v935_v9 }
 0x35a   : > { %1102 = vrot.lane.b32.xlu0 %v2115_v1, %s1363_s5  ;;  %1064 = vrot.lane.b32.xlu1 %v2072_v23, %s1365_s7 }
 0x35b   : > { %1066 = vrot.lane.b32.xlu2 %v2155_v30, %s1365_s7 }
 0x35c   : > { %v971_v40 = vpop.permute.xlu0 %970  ;;  %v941_v11 = vpop.permute.xlu1 %940 }
 0x35d   : > { %v969_v12 = vpop.permute.xlu2 %968  ;;  %980 = vst.msk [vmem:[%s1437_s28 + $0xd7] sm:$0x1] %vm416_vm13, %v971_v40 }
 0x35e   : > { %979 = vst.msk [vmem:[%s1437_s28 + $0xb7] sm:$0x1] %vm416_vm13, %v969_v12 }
 0x35f   : > { %953 = vst.msk [vmem:[%s1437_s28 + $0x76] sm:$0x1] %vm416_vm13, %v941_v11 }
 0x362   : > { %1108 = vrot.lane.b32.xlu0 %v2135_v29, %s1363_s5  ;;  %1078 = vrot.lane.b32.xlu1 %v1648_v37, %s1363_s5 }
 0x363   : > { %1080 = vrot.lane.b32.xlu2 %v2008_v38, %s1363_s5 }
 0x364   : > { %v985_v39 = vpop.permute.xlu0 %984  ;;  %v947_v13 = vpop.permute.xlu1 %946 }
 0x365   : > { %v983_v14 = vpop.permute.xlu2 %982  ;;  %999 = vst.msk [vmem:[%s1437_s28 + $0x38] sm:$0x1] %vm416_vm13, %v985_v39 }
 0x366   : > { %998 = vst.msk [vmem:[%s1437_s28 + $0x18] sm:$0x1] %vm416_vm13, %v983_v14 }
 0x367   : > { %956 = vst.msk [vmem:[%s1437_s28 + $0xd6] sm:$0x1] %vm416_vm13, %v947_v13 }
 0x36a   : > { %1114 = vrot.lane.b32.xlu0 %v2155_v30, %s1363_s5  ;;  %1084 = vrot.lane.b32.xlu1 %v2080_v48, %s1363_s5 }
 0x36b   : > { %1086 = vrot.lane.b32.xlu2 %v2024_v20, %s1363_s5 }
 0x36c   : > { %v991_v35 = vpop.permute.xlu0 %990  ;;  %v961_v15 = vpop.permute.xlu1 %960 }
 0x36d   : > { %v989_v16 = vpop.permute.xlu2 %988  ;;  %1002 = vst.msk [vmem:[%s1437_s28 + $0x98] sm:$0x1] %vm416_vm13, %v991_v35 }
 0x36e   : > { %1001 = vst.msk [vmem:[%s1437_s28 + $0x78] sm:$0x1] %vm416_vm13, %v989_v16 }
 0x36f   : > { %975 = vst.msk [vmem:[%s1437_s28 + $0x37] sm:$0x1] %vm416_vm13, %v961_v15 }
 0x372   : > { %1128 = vrot.lane.b32.xlu0 %v2008_v38, %s1364_s6  ;;  %1090 = vrot.lane.b32.xlu1 %v2100_v51, %s1363_s5 }
 0x373   : > { %1092 = vrot.lane.b32.xlu2 %v2040_v21, %s1363_s5 }
 0x374   : > { %v997_v36 = vpop.permute.xlu0 %996  ;;  %v967_v42 = vpop.permute.xlu1 %966 }
 0x375   : > { %v995_v17 = vpop.permute.xlu2 %994  ;;  %1005 = vst.msk [vmem:[%s1437_s28 + $0xf8] sm:$0x1] %vm416_vm13, %v997_v36 }
 0x376   : > { %1004 = vst.msk [vmem:[%s1437_s28 + $0xd8] sm:$0x1] %vm416_vm13, %v995_v17 }
 0x377   : > { %978 = vst.msk [vmem:[%s1437_s28 + $0x97] sm:$0x1] %vm416_vm13, %v967_v42 }
 0x37a   : > { %1134 = vrot.lane.b32.xlu0 %v2024_v20, %s1364_s6  ;;  %1104 = vrot.lane.b32.xlu1 %v2119_v27, %s1363_s5 }
 0x37b   : > { %1106 = vrot.lane.b32.xlu2 %v2056_v22, %s1363_s5 }
 0x37c   : > { %v1011_v38 = vpop.permute.xlu0 %1010  ;;  %v973_v34 = vpop.permute.xlu1 %972 }
 0x37d   : > { %v1009_v44 = vpop.permute.xlu2 %1008  ;;  %1024 = vst.msk [vmem:[%s1437_s28 + $0x59] sm:$0x1] %vm416_vm13, %v1011_v38 }
 0x37e   : > { %1023 = vst.msk [vmem:[%s1437_s28 + $0x39] sm:$0x1] %vm416_vm13, %v1009_v44 }
 0x37f   : > { %981 = vst.msk [vmem:[%s1437_s28 + $0xf7] sm:$0x1] %vm416_vm13, %v973_v34 }
 0x382   : > { %1140 = vrot.lane.b32.xlu0 %v2040_v21, %s1364_s6  ;;  %1110 = vrot.lane.b32.xlu1 %v2139_v57, %s1363_s5 }
 0x383   : > { %1112 = vrot.lane.b32.xlu2 %v2072_v23, %s1363_s5 }
 0x384   : > { %v1017_v20 = vpop.permute.xlu0 %1016  ;;  %v987_v18 = vpop.permute.xlu1 %986 }
 0x385   : > { %v1015_v41 = vpop.permute.xlu2 %1014  ;;  %1027 = vst.msk [vmem:[%s1437_s28 + $0xb9] sm:$0x1] %vm416_vm13, %v1017_v20 }
 0x386   : > { %1026 = vst.msk [vmem:[%s1437_s28 + $0x99] sm:$0x1] %vm416_vm13, %v1015_v41 }
 0x387   : > { %1000 = vst.msk [vmem:[%s1437_s28 + $0x58] sm:$0x1] %vm416_vm13, %v987_v18 }
 0x38a   : > { %1154 = vrot.lane.b32.xlu0 %v2056_v22, %s1364_s6  ;;  %1116 = vrot.lane.b32.xlu1 %v2159_v60, %s1363_s5 }
 0x38b   : > { %1126 = vrot.lane.b32.xlu2 %v1648_v37, %s1364_s6 }
 0x38c   : > { %v1031_v21 = vpop.permute.xlu0 %1030  ;;  %v993_v43 = vpop.permute.xlu1 %992 }
 0x38d   : > { %v1021_v19 = vpop.permute.xlu2 %1020  ;;  %1046 = vst.msk [vmem:[%s1437_s28 + $0x1a] sm:$0x1] %vm416_vm13, %v1031_v21 }
 0x38e   : > { %1029 = vst.msk [vmem:[%s1437_s28 + $0xf9] sm:$0x1] %vm416_vm13, %v1021_v19 }
 0x38f   : > { %1003 = vst.msk [vmem:[%s1437_s28 + $0xb8] sm:$0x1] %vm416_vm13, %v993_v43 }
 0x392   : > { %1160 = vrot.lane.b32.xlu0 %v2072_v23, %s1364_s6  ;;  %1130 = vrot.lane.b32.xlu1 %v2076_v47, %s1364_s6 }
 0x393   : > { %1132 = vrot.lane.b32.xlu2 %v2080_v48, %s1364_s6 }
 0x394   : > { %v1037_v37 = vpop.permute.xlu0 %1036  ;;  %v1007_v22 = vpop.permute.xlu1 %1006 }
 0x395   : > { %v1035_v45 = vpop.permute.xlu2 %1034  ;;  %1049 = vst.msk [vmem:[%s1437_s28 + $0x7a] sm:$0x1] %vm416_vm13, %v1037_v37 }
 0x396   : > { %1048 = vst.msk [vmem:[%s1437_s28 + $0x5a] sm:$0x1] %vm416_vm13, %v1035_v45 }
 0x397   : > { %1022 = vst.msk [vmem:[%s1437_s28 + $0x19] sm:$0x1] %vm416_vm13, %v1007_v22 }
 0x39a   : > { %1136 = vrot.lane.b32.xlu1 %v2096_v24, %s1364_s6 }
 0x39b   : > { %1138 = vrot.lane.b32.xlu2 %v2100_v51, %s1364_s6 }
 0x39c   : > { %v1043_v23 = vpop.permute.xlu0 %1042  ;;  %v1013_v47 = vpop.permute.xlu1 %1012 }
 0x39d   : > { %v1041_v48 = vpop.permute.xlu2 %1040  ;;  %1052 = vst.msk [vmem:[%s1437_s28 + $0xda] sm:$0x1] %vm416_vm13, %v1043_v23 }
 0x39e   : > { %1051 = vst.msk [vmem:[%s1437_s28 + $0xba] sm:$0x1] %vm416_vm13, %v1041_v48 }
 0x39f   : > { %1025 = vst.msk [vmem:[%s1437_s28 + $0x79] sm:$0x1] %vm416_vm13, %v1013_v47 }
 0x3a2   : > { %1150 = vrot.lane.b32.xlu1 %v2115_v1, %s1364_s6 }
 0x3a3   : > { %1152 = vrot.lane.b32.xlu2 %v2119_v27, %s1364_s6 }
 0x3a4   : > { %v1057_v24 = vpop.permute.xlu0 %1056  ;;  %v1019_v51 = vpop.permute.xlu1 %1018 }
 0x3a5   : > { %v1055_v46 = vpop.permute.xlu2 %1054  ;;  %1071 = vst.msk [vmem:[%s1437_s28 + $0x3b] sm:$0x1] %vm416_vm13, %v1057_v24 }
 0x3a6   : > { %1070 = vst.msk [vmem:[%s1437_s28 + $0x1b] sm:$0x1] %vm416_vm13, %v1055_v46 }
 0x3a7   : > { %1028 = vst.msk [vmem:[%s1437_s28 + $0xd9] sm:$0x1] %vm416_vm13, %v1019_v51 }
 0x3aa   : > { %1156 = vrot.lane.b32.xlu1 %v2135_v29, %s1364_s6 }
 0x3ab   : > { %1158 = vrot.lane.b32.xlu2 %v2139_v57, %s1364_s6 }
 0x3ac   : > { %v1063_v1 = vpop.permute.xlu0 %1062  ;;  %v1033_v27 = vpop.permute.xlu1 %1032 }
 0x3ad   : > { %v1061_v49 = vpop.permute.xlu2 %1060  ;;  %1074 = vst.msk [vmem:[%s1437_s28 + $0x9b] sm:$0x1] %vm416_vm13, %v1063_v1 }
 0x3ae   : > { %1073 = vst.msk [vmem:[%s1437_s28 + $0x7b] sm:$0x1] %vm416_vm13, %v1061_v49 }
 0x3af   : > { %1047 = vst.msk [vmem:[%s1437_s28 + $0x3a] sm:$0x1] %vm416_vm13, %v1033_v27 }
 0x3b2   : > { %1162 = vrot.lane.b32.xlu1 %v2155_v30, %s1364_s6 }
 0x3b3   : > { %1164 = vrot.lane.b32.xlu2 %v2159_v60, %s1364_s6 }
 0x3b4   : > { %v1069_v29 = vpop.permute.xlu0 %1068  ;;  %v1039_v57 = vpop.permute.xlu1 %1038 }
 0x3b5   : > { %v1067_v25 = vpop.permute.xlu2 %1066  ;;  %1077 = vst.msk [vmem:[%s1437_s28 + $0xfb] sm:$0x1] %vm416_vm13, %v1069_v29 }
 0x3b6   : > { %1076 = vst.msk [vmem:[%s1437_s28 + $0xdb] sm:$0x1] %vm416_vm13, %v1067_v25 }
 0x3b7   : > { %1050 = vst.msk [vmem:[%s1437_s28 + $0x9a] sm:$0x1] %vm416_vm13, %v1039_v57 }
 0x3bc   : > { %v1083_v50 = vpop.permute.xlu0 %1082  ;;  %v1045_v26 = vpop.permute.xlu1 %1044 }
 0x3bd   : > { %v1081_v30 = vpop.permute.xlu2 %1080  ;;  %1096 = vst.msk [vmem:[%s1437_s28 + $0x5c] sm:$0x1] %vm416_vm13, %v1083_v50 }
 0x3be   : > { %1095 = vst.msk [vmem:[%s1437_s28 + $0x3c] sm:$0x1] %vm416_vm13, %v1081_v30 }
 0x3bf   : > { %1053 = vst.msk [vmem:[%s1437_s28 + $0xfa] sm:$0x1] %vm416_vm13, %v1045_v26 }
 0x3c4   : > { %v1089_v60 = vpop.permute.xlu0 %1088  ;;  %v1059_v52 = vpop.permute.xlu1 %1058 }
 0x3c5   : > { %v1087_v53 = vpop.permute.xlu2 %1086  ;;  %1099 = vst.msk [vmem:[%s1437_s28 + $0xbc] sm:$0x1] %vm416_vm13, %v1089_v60 }
 0x3c6   : > { %1098 = vst.msk [vmem:[%s1437_s28 + $0x9c] sm:$0x1] %vm416_vm13, %v1087_v53 }
 0x3c7   : > { %1072 = vst.msk [vmem:[%s1437_s28 + $0x5b] sm:$0x1] %vm416_vm13, %v1059_v52 }
 0x3cc   : > { %v1103_v28 = vpop.permute.xlu0 %1102  ;;  %v1065_v54 = vpop.permute.xlu1 %1064 }
 0x3cd   : > { %v1093_v55 = vpop.permute.xlu2 %1092  ;;  %1118 = vst.msk [vmem:[%s1437_s28 + $0x1d] sm:$0x1] %vm416_vm13, %v1103_v28 }
 0x3ce   : > { %1101 = vst.msk [vmem:[%s1437_s28 + $0xfc] sm:$0x1] %vm416_vm13, %v1093_v55 }
 0x3cf   : > { %1075 = vst.msk [vmem:[%s1437_s28 + $0xbb] sm:$0x1] %vm416_vm13, %v1065_v54 }
 0x3d4   : > { %v1109_v56 = vpop.permute.xlu0 %1108  ;;  %v1079_v58 = vpop.permute.xlu1 %1078 }
 0x3d5   : > { %v1107_v59 = vpop.permute.xlu2 %1106  ;;  %1121 = vst.msk [vmem:[%s1437_s28 + $0x7d] sm:$0x1] %vm416_vm13, %v1109_v56 }
 0x3d6   : > { %1120 = vst.msk [vmem:[%s1437_s28 + $0x5d] sm:$0x1] %vm416_vm13, %v1107_v59 }
 0x3d7   : > { %1094 = vst.msk [vmem:[%s1437_s28 + $0x1c] sm:$0x1] %vm416_vm13, %v1079_v58 }
 0x3dc   : > { %v1115_v31 = vpop.permute.xlu0 %1114  ;;  %v1085_v61 = vpop.permute.xlu1 %1084 }
 0x3dd   : > { %v1113_v62 = vpop.permute.xlu2 %1112  ;;  %1124 = vst.msk [vmem:[%s1437_s28 + $0xdd] sm:$0x1] %vm416_vm13, %v1115_v31 }
 0x3de   : > { %1123 = vst.msk [vmem:[%s1437_s28 + $0xbd] sm:$0x1] %vm416_vm13, %v1113_v62 }
 0x3df   : > { %1097 = vst.msk [vmem:[%s1437_s28 + $0x7c] sm:$0x1] %vm416_vm13, %v1085_v61 }
 0x3e4   : > { %v1129_v33 = vpop.permute.xlu0 %1128  ;;  %v1091_v3 = vpop.permute.xlu1 %1090 }
 0x3e5   : > { %v1127_v32 = vpop.permute.xlu2 %1126  ;;  %1143 = vst.msk [vmem:[%s1437_s28 + $0x3e] sm:$0x1] %vm416_vm13, %v1129_v33 }
 0x3e6   : > { %1142 = vst.msk [vmem:[%s1437_s28 + $0x1e] sm:$0x1] %vm416_vm13, %v1127_v32 }
 0x3e7   : > { %1100 = vst.msk [vmem:[%s1437_s28 + $0xdc] sm:$0x1] %vm416_vm13, %v1091_v3 }
 0x3ec   : > { %v1135_v63 = vpop.permute.xlu0 %1134  ;;  %v1105_v0 = vpop.permute.xlu1 %1104 }
 0x3ed   : > { %v1133_v2 = vpop.permute.xlu2 %1132  ;;  %1146 = vst.msk [vmem:[%s1437_s28 + $0x9e] sm:$0x1] %vm416_vm13, %v1135_v63 }
 0x3ee   : > { %1145 = vst.msk [vmem:[%s1437_s28 + $0x7e] sm:$0x1] %vm416_vm13, %v1133_v2 }
 0x3ef   : > { %1119 = vst.msk [vmem:[%s1437_s28 + $0x3d] sm:$0x1] %vm416_vm13, %v1105_v0 }
 0x3f4   : > { %v1141_v4 = vpop.permute.xlu0 %1140  ;;  %v1111_v5 = vpop.permute.xlu1 %1110 }
 0x3f5   : > { %v1139_v6 = vpop.permute.xlu2 %1138  ;;  %1149 = vst.msk [vmem:[%s1437_s28 + $0xfe] sm:$0x1] %vm416_vm13, %v1141_v4 }
 0x3f6   : > { %1148 = vst.msk [vmem:[%s1437_s28 + $0xde] sm:$0x1] %vm416_vm13, %v1139_v6 }
 0x3f7   : > { %1122 = vst.msk [vmem:[%s1437_s28 + $0x9d] sm:$0x1] %vm416_vm13, %v1111_v5 }
 0x3fc   : > { %v1155_v7 = vpop.permute.xlu0 %1154  ;;  %v1117_v8 = vpop.permute.xlu1 %1116 }
 0x3fd   : > { %v1153_v9 = vpop.permute.xlu2 %1152  ;;  %1168 = vst.msk [vmem:[%s1437_s28 + $0x5f] sm:$0x1] %vm416_vm13, %v1155_v7 }
 0x3fe   : > { %1167 = vst.msk [vmem:[%s1437_s28 + $0x3f] sm:$0x1] %vm416_vm13, %v1153_v9 }
 0x3ff   : > { %1125 = vst.msk [vmem:[%s1437_s28 + $0xfd] sm:$0x1] %vm416_vm13, %v1117_v8 }
 0x404   : > { %v1161_v10 = vpop.permute.xlu0 %1160  ;;  %v1131_v40 = vpop.permute.xlu1 %1130 }
 0x405   : > { %v1159_v11 = vpop.permute.xlu2 %1158  ;;  %1171 = vst.msk [vmem:[%s1437_s28 + $0xbf] sm:$0x1] %vm416_vm13, %v1161_v10 }
 0x406   : > { %1170 = vst.msk [vmem:[%s1437_s28 + $0x9f] sm:$0x1] %vm416_vm13, %v1159_v11 }
 0x407   : > { %1144 = vst.msk [vmem:[%s1437_s28 + $0x5e] sm:$0x1] %vm416_vm13, %v1131_v40 }
 0x40c   : > { %v1137_v12 = vpop.permute.xlu1 %1136 }
 0x40d   : > { %v1165_v39 = vpop.permute.xlu2 %1164  ;;  %1147 = vst.msk [vmem:[%s1437_s28 + $0xbe] sm:$0x1] %vm416_vm13, %v1137_v12 }
 0x40e   : > { %1173 = vst.msk [vmem:[%s1437_s28 + $0xff] sm:$0x1] %vm416_vm13, %v1165_v39 }
 0x414   : > { %v1151_v13 = vpop.permute.xlu1 %1150 }
 0x415   : > { %1166 = vst.msk [vmem:[%s1437_s28 + $0x1f] sm:$0x1] %vm416_vm13, %v1151_v13 }
 0x41c   : > { %v1157_v14 = vpop.permute.xlu1 %1156 }
 0x41d   : > { %1169 = vst.msk [vmem:[%s1437_s28 + $0x7f] sm:$0x1] %vm416_vm13, %v1157_v14 }
 0x424   : > { %v1163_v35 = vpop.permute.xlu1 %1162 }
 0x425   : > { %1172 = vst.msk [vmem:[%s1437_s28 + $0xdf] sm:$0x1] %vm416_vm13, %v1163_v35 }
 0x426 PF: > { %s12_s11 = sadd.s32 1, %s1357_s11   ;;  %s2631_s9 = smov %s1353_s10 }
 0x427   : > { %p9_p5 = scmp.ge.s32.totalorder %s12_s11, 4   ;;  %s2632_s10 = smov %s2634_s12 }
 0x429   :  { %11 = sbr.rel (!%p9_p5) target bundleno = 2 (0x2), region = 61 }

</bundles_post_ra>
